<compile_context>
chip_gen: v7x
topology: tpu7x:2x2x1
jax: 0.10.0
libtpu: 0.0.40
codegen_flags: <defaults>
</compile_context>

<pallas_src>
import functools
import math

import jax
import jax.numpy as jnp
from jax import lax
from jax.experimental import pallas as pl
from jax.experimental.pallas import tpu as pltpu


def _round_up(x, m):
    return (x + m - 1) // m * m


def _pick_row_tile(oh, wp, target_flat_rows=1024):
    """Output-row tile TH such that TH*WP (flat out rows) is a multiple of 8."""
    th = max(1, min(oh, max(1, target_flat_rows // max(wp, 1))))
    q = 8 // math.gcd(wp, 8)          # smallest q with (q * wp) % 8 == 0
    return _round_up(th, q)


# ---------------------------------------------------------------------------
# Pallas kernel: one (batch, output-row-tile) grid step, stride-1 direct conv.
#
#   x_ref : (TR, C)         bf16  haloed activation slab, spatial flattened
#   w_ref : (KH*KW, C, OCP) bf16  weight-norm-scaled weights (resident)
#   b_ref : (1, OCP)        f32   bias (resident)
#   o_ref : (LT, OCP)             LT = TH*WP flat output rows; the WP-OW
#                                 "wrap" columns of each row are junk and are
#                                 dropped in the wrapper.
# ---------------------------------------------------------------------------
def _wn_conv_kernel(x_ref, w_ref, b_ref, o_ref, *, kh, kw, wp, lt):
    # TODO(synk): for very small C the MXU contraction depth could be raised
    # ~KH*KW-fold by assembling an (LT, KH*KW*C) patch tile in VMEM; kept as a
    # follow-up because it needs unaligned minor-dim concat / masked lane
    # stores — the per-tap dots below are guaranteed to lower.
    acc = None
    for i in range(kh):
        for j in range(kw):
            # Static shifted window: row r of `win` is the haloed pixel at
            # flat index i*WP + j + r inside this tile's slab.
            win = x_ref[pl.ds(i * wp + j, lt), :]                 # (LT, C) bf16
            part = jnp.dot(win, w_ref[i * kw + j],                # MXU, f32 acc
                           preferred_element_type=jnp.float32)
            acc = part if acc is None else acc + part             # vreg/MRB sum
    # Scale already folded into the weights; epilogue is just the bias add.
    o_ref[...] = (acc + b_ref[...]).astype(o_ref.dtype)


# ---------------------------------------------------------------------------
# Wrapper
# ---------------------------------------------------------------------------
@functools.partial(jax.jit, static_argnames=("stride", "padding", "row_tile"))
def weight_norm_conv2d(x, v, g, b, *, stride=1, padding=0, row_tile=None):
    """Forward of WeightNormConv2d.

    x: (N, C, H, W); v: (OC, C, KH, KW) = weight_v; g: (OC,) = weight_g;
    b: (OC,) = bias.  Returns (N, OC, OH, OW) in NCHW (like nn.Conv2d).
    """
    if stride != 1:
        # TODO(synk): stride > 1 / dilation / groups are not mapped onto the
        # flattened shifted-window Pallas path; only the module's default
        # stride=1 configuration is implemented here.
        raise NotImplementedError("Pallas WeightNormConv2d supports stride=1 only")

    n, c, h, w = x.shape
    oc, _, kh, kw = v.shape
    hp, wp = h + 2 * padding, w + 2 * padding
    oh, ow = hp - kh + 1, wp - kw + 1
    ocp = _round_up(oc, 128)            # lane-dense output / full MXU columns

    # ---- output-row tiling (bounds VMEM, enables DMA pipelining + megacore).
    q = 8 // math.gcd(wp, 8)
    th = _pick_row_tile(oh, wp) if row_tile is None else _round_up(max(1, row_tile), q)
    oh_pad = _round_up(oh, th)          # junk rows beyond OH are sliced off
    n_rt = oh_pad // th
    lt = th * wp                        # flat out rows per tile (multiple of 8)
    thk = th + kh - 1                   # haloed input rows per tile
    tr = _round_up(thk * wp + (kw - 1), 8)   # flat slab rows incl. wrap slack
    hp_need = oh_pad + kh - 1           # padded image rows needed by all tiles

    # ---- weights: fold g/||v|| into v in f32, THEN cast bf16 (precision kept).
    vf = v.astype(jnp.float32)
    scale = g.astype(jnp.float32) * lax.rsqrt(jnp.sum(vf * vf, axis=(1, 2, 3)))
    w_sc = vf * scale[:, None, None, None]                         # (OC,C,KH,KW) f32
    w_sc = w_sc.transpose(2, 3, 1, 0).reshape(kh * kw, c, oc)      # (KH*KW,C,OC)
    w_sc = jnp.pad(w_sc, ((0, 0), (0, 0), (0, ocp - oc))).astype(jnp.bfloat16)
    bias_p = jnp.pad(b.astype(jnp.float32), (0, ocp - oc)).reshape(1, ocp)

    # ---- activation: NHWC, spatially padded (+ bottom pad to hp_need), bf16.
    x_nhwc = jnp.pad(
        x.transpose(0, 2, 3, 1).astype(jnp.bfloat16),
        ((0, 0), (padding, padding + (hp_need - hp)), (padding, padding), (0, 0)))
    # Per-row-tile haloed slabs: tile r holds padded rows [r*TH, r*TH + THK).
    rows = jnp.arange(n_rt)[:, None] * th + jnp.arange(thk)[None, :]   # (n_rt, THK)
    x_t = x_nhwc[:, rows]                                 # (N, n_rt, THK, WP, C)
    x_t = x_t.reshape(n, n_rt, thk * wp, c)
    x_t = jnp.pad(x_t, ((0, 0), (0, 0), (0, tr - thk * wp), (0, 0)))

    out_flat = pl.pallas_call(
        functools.partial(_wn_conv_kernel, kh=kh, kw=kw, wp=wp, lt=lt),
        out_shape=jax.ShapeDtypeStruct((n, oh_pad * wp, ocp), x.dtype),
        grid=(n, n_rt),
        in_specs=[
            pl.BlockSpec((None, None, tr, c), lambda bi, ri: (bi, ri, 0, 0)),  # slab
            pl.BlockSpec((kh * kw, c, ocp), lambda bi, ri: (0, 0, 0)),         # weights (resident)
            pl.BlockSpec((1, ocp), lambda bi, ri: (0, 0)),                     # bias (resident)
        ],
        out_specs=pl.BlockSpec((None, lt, ocp), lambda bi, ri: (bi, ri, 0)),
        compiler_params=pltpu.CompilerParams(
            # All grid steps are independent -> both axes parallel (v7x 2 TCs).
            dimension_semantics=("parallel", "parallel"),
            # 64 MiB fits v7x's physical VMEM; on v5e/v6e (128 MiB) larger
            # row_tile values + a higher limit can be swept.
            vmem_limit_bytes=64 * 1024 * 1024),
    )(x_t, w_sc, bias_p)

    # ---- un-flatten: drop junk wrap columns, padded rows and OC padding; NCHW.
    out = out_flat.reshape(n, oh_pad, wp, ocp)[:, :oh, :ow, :oc]
    return out.transpose(0, 3, 1, 2)


# ---------------------------------------------------------------------------
# Reference (pure JAX) for validation
# ---------------------------------------------------------------------------
def _reference(x, v, g, b, *, stride=1, padding=1):
    norm = jnp.sqrt(jnp.sum(v * v, axis=(1, 2, 3), keepdims=True))
    w = v * (g.reshape(-1, 1, 1, 1) / norm)
    out = lax.conv_general_dilated(
        x, w, window_strides=(stride, stride),
        padding=[(padding, padding), (padding, padding)],
        dimension_numbers=("NCHW", "OIHW", "NCHW"))
    return out + b.reshape(1, -1, 1, 1)


if __name__ == "__main__":
    # WeightNormConv2d(in_channels=4, out_channels=8, kernel_size=3, padding=1)
    N, C, H, W = 2, 4, 16, 16
    OC, KH, KW = 8, 3, 3
    stride, padding = 1, 1

    key = jax.random.PRNGKey(0)
    kx, kv, kg, kb = jax.random.split(key, 4)
    x = jax.random.normal(kx, (N, C, H, W), dtype=jnp.float32)
    v = jax.random.normal(kv, (OC, C, KH, KW), dtype=jnp.float32) * 0.1  # weight_v
    g = jax.random.uniform(kg, (OC,), dtype=jnp.float32) + 0.5           # weight_g
    b = jax.random.normal(kb, (OC,), dtype=jnp.float32) * 0.1            # bias

    ref = _reference(x, v, g, b, stride=stride, padding=padding)

    # Run 1: explicit small row tile -> exercises the multi-row-tile (halo) path.
    out_tiled = weight_norm_conv2d(x, v, g, b, stride=stride, padding=padding,
                                   row_tile=8)
    out_tiled = jax.block_until_ready(out_tiled)
    assert out_tiled.shape == (N, OC, H, W), out_tiled.shape
    err_tiled = float(jnp.max(jnp.abs(out_tiled - ref)))
    assert err_tiled < 5e-2, f"max abs error (row_tile=8) {err_tiled} vs reference"

    # Run 2: auto row tile (single tile per image at this toy size).
    out_auto = weight_norm_conv2d(x, v, g, b, stride=stride, padding=padding)
    out_auto = jax.block_until_ready(out_auto)
    assert out_auto.shape == (N, OC, H, W), out_auto.shape
    err_auto = float(jnp.max(jnp.abs(out_auto - ref)))
    assert err_auto < 5e-2, f"max abs error (auto tile) {err_auto} vs reference"

    print("KERNEL_OK")
</pallas_src>

<mosaic_0001>
module attributes {stable_mosaic.version = 11 : i64} {
  func.func @_wn_conv_kernel(%arg0: i32, %arg1: i32, %arg2: memref<1x1x184x4xbf16, #tpu.memory_space<vmem>>, %arg3: memref<9x4x128xbf16, #tpu.memory_space<vmem>>, %arg4: memref<1x128xf32, #tpu.memory_space<vmem>>, %arg5: memref<1x144x128xf32, #tpu.memory_space<vmem>>) attributes {dimension_semantics = [#tpu.dimension_semantics<parallel>, #tpu.dimension_semantics<parallel>], iteration_bounds = array<i64: 2, 2>, scalar_prefetch = 0 : i64, scratch_operands = 0 : i64, tpu.core_type = #tpu.core_type<tc>, window_params = [{transform_indices = @transform_0, window_bounds = array<i64: 1, 1, 184, 4>}, {pipeline_mode = #tpu.pipeline_mode<synchronous>, transform_indices = @transform_1, window_bounds = array<i64: 9, 4, 128>}, {pipeline_mode = #tpu.pipeline_mode<synchronous>, transform_indices = @transform_2, window_bounds = array<i64: 1, 128>}, {transform_indices = @transform_3, window_bounds = array<i64: 1, 144, 128>}]} {
    %c0 = arith.constant 0 : index
    %c0_0 = arith.constant 0 : index
    %c0_1 = arith.constant 0 : index
    %c0_2 = arith.constant 0 : index
    %0 = vector.load %arg2[%c0, %c0_0, %c0_1, %c0_2] : memref<1x1x184x4xbf16, #tpu.memory_space<vmem>>, vector<1x1x144x4xbf16>
    %1 = vector.shape_cast %0 : vector<1x1x144x4xbf16> to vector<144x4xbf16>
    %c0_3 = arith.constant 0 : index
    %c0_4 = arith.constant 0 : index
    %c0_5 = arith.constant 0 : index
    %2 = vector.load %arg3[%c0_3, %c0_4, %c0_5] : memref<9x4x128xbf16, #tpu.memory_space<vmem>>, vector<1x4x128xbf16>
    %3 = vector.shape_cast %2 : vector<1x4x128xbf16> to vector<4x128xbf16>
    %cst = arith.constant dense<0.000000e+00> : vector<144x128xf32>
    %4 = tpu.matmul %1, %3, %cst {dimension_numbers = #tpu.dot_dimension_numbers<[1], [0], [0], [1], [0, 0, 1, 1], [], []>} : vector<144x4xbf16>, vector<4x128xbf16>, vector<144x128xf32> -> vector<144x128xf32>
    %c0_6 = arith.constant 0 : index
    %c0_7 = arith.constant 0 : index
    %c1 = arith.constant 1 : index
    %c0_8 = arith.constant 0 : index
    %5 = vector.load %arg2[%c0_6, %c0_7, %c1, %c0_8] : memref<1x1x184x4xbf16, #tpu.memory_space<vmem>>, vector<1x1x144x4xbf16>
    %6 = vector.shape_cast %5 : vector<1x1x144x4xbf16> to vector<144x4xbf16>
    %c1_9 = arith.constant 1 : index
    %c0_10 = arith.constant 0 : index
    %c0_11 = arith.constant 0 : index
    %7 = vector.load %arg3[%c1_9, %c0_10, %c0_11] : memref<9x4x128xbf16, #tpu.memory_space<vmem>>, vector<1x4x128xbf16>
    %8 = vector.shape_cast %7 : vector<1x4x128xbf16> to vector<4x128xbf16>
    %cst_12 = arith.constant dense<0.000000e+00> : vector<144x128xf32>
    %9 = tpu.matmul %6, %8, %cst_12 {dimension_numbers = #tpu.dot_dimension_numbers<[1], [0], [0], [1], [0, 0, 1, 1], [], []>} : vector<144x4xbf16>, vector<4x128xbf16>, vector<144x128xf32> -> vector<144x128xf32>
    %10 = arith.addf %4, %9 : vector<144x128xf32>
    %c0_13 = arith.constant 0 : index
    %c0_14 = arith.constant 0 : index
    %c2 = arith.constant 2 : index
    %c0_15 = arith.constant 0 : index
    %11 = vector.load %arg2[%c0_13, %c0_14, %c2, %c0_15] : memref<1x1x184x4xbf16, #tpu.memory_space<vmem>>, vector<1x1x144x4xbf16>
    %12 = vector.shape_cast %11 : vector<1x1x144x4xbf16> to vector<144x4xbf16>
    %c2_16 = arith.constant 2 : index
    %c0_17 = arith.constant 0 : index
    %c0_18 = arith.constant 0 : index
    %13 = vector.load %arg3[%c2_16, %c0_17, %c0_18] : memref<9x4x128xbf16, #tpu.memory_space<vmem>>, vector<1x4x128xbf16>
    %14 = vector.shape_cast %13 : vector<1x4x128xbf16> to vector<4x128xbf16>
    %cst_19 = arith.constant dense<0.000000e+00> : vector<144x128xf32>
    %15 = tpu.matmul %12, %14, %cst_19 {dimension_numbers = #tpu.dot_dimension_numbers<[1], [0], [0], [1], [0, 0, 1, 1], [], []>} : vector<144x4xbf16>, vector<4x128xbf16>, vector<144x128xf32> -> vector<144x128xf32>
    %16 = arith.addf %10, %15 : vector<144x128xf32>
    %c0_20 = arith.constant 0 : index
    %c0_21 = arith.constant 0 : index
    %c18 = arith.constant 18 : index
    %c0_22 = arith.constant 0 : index
    %17 = vector.load %arg2[%c0_20, %c0_21, %c18, %c0_22] : memref<1x1x184x4xbf16, #tpu.memory_space<vmem>>, vector<1x1x144x4xbf16>
    %18 = vector.shape_cast %17 : vector<1x1x144x4xbf16> to vector<144x4xbf16>
    %c3 = arith.constant 3 : index
    %c0_23 = arith.constant 0 : index
    %c0_24 = arith.constant 0 : index
    %19 = vector.load %arg3[%c3, %c0_23, %c0_24] : memref<9x4x128xbf16, #tpu.memory_space<vmem>>, vector<1x4x128xbf16>
    %20 = vector.shape_cast %19 : vector<1x4x128xbf16> to vector<4x128xbf16>
    %cst_25 = arith.constant dense<0.000000e+00> : vector<144x128xf32>
    %21 = tpu.matmul %18, %20, %cst_25 {dimension_numbers = #tpu.dot_dimension_numbers<[1], [0], [0], [1], [0, 0, 1, 1], [], []>} : vector<144x4xbf16>, vector<4x128xbf16>, vector<144x128xf32> -> vector<144x128xf32>
    %22 = arith.addf %16, %21 : vector<144x128xf32>
    %c0_26 = arith.constant 0 : index
    %c0_27 = arith.constant 0 : index
    %c19 = arith.constant 19 : index
    %c0_28 = arith.constant 0 : index
    %23 = vector.load %arg2[%c0_26, %c0_27, %c19, %c0_28] : memref<1x1x184x4xbf16, #tpu.memory_space<vmem>>, vector<1x1x144x4xbf16>
    %24 = vector.shape_cast %23 : vector<1x1x144x4xbf16> to vector<144x4xbf16>
    %c4 = arith.constant 4 : index
    %c0_29 = arith.constant 0 : index
    %c0_30 = arith.constant 0 : index
    %25 = vector.load %arg3[%c4, %c0_29, %c0_30] : memref<9x4x128xbf16, #tpu.memory_space<vmem>>, vector<1x4x128xbf16>
    %26 = vector.shape_cast %25 : vector<1x4x128xbf16> to vector<4x128xbf16>
    %cst_31 = arith.constant dense<0.000000e+00> : vector<144x128xf32>
    %27 = tpu.matmul %24, %26, %cst_31 {dimension_numbers = #tpu.dot_dimension_numbers<[1], [0], [0], [1], [0, 0, 1, 1], [], []>} : vector<144x4xbf16>, vector<4x128xbf16>, vector<144x128xf32> -> vector<144x128xf32>
    %28 = arith.addf %22, %27 : vector<144x128xf32>
    %c0_32 = arith.constant 0 : index
    %c0_33 = arith.constant 0 : index
    %c20 = arith.constant 20 : index
    %c0_34 = arith.constant 0 : index
    %29 = vector.load %arg2[%c0_32, %c0_33, %c20, %c0_34] : memref<1x1x184x4xbf16, #tpu.memory_space<vmem>>, vector<1x1x144x4xbf16>
    %30 = vector.shape_cast %29 : vector<1x1x144x4xbf16> to vector<144x4xbf16>
    %c5 = arith.constant 5 : index
    %c0_35 = arith.constant 0 : index
    %c0_36 = arith.constant 0 : index
    %31 = vector.load %arg3[%c5, %c0_35, %c0_36] : memref<9x4x128xbf16, #tpu.memory_space<vmem>>, vector<1x4x128xbf16>
    %32 = vector.shape_cast %31 : vector<1x4x128xbf16> to vector<4x128xbf16>
    %cst_37 = arith.constant dense<0.000000e+00> : vector<144x128xf32>
    %33 = tpu.matmul %30, %32, %cst_37 {dimension_numbers = #tpu.dot_dimension_numbers<[1], [0], [0], [1], [0, 0, 1, 1], [], []>} : vector<144x4xbf16>, vector<4x128xbf16>, vector<144x128xf32> -> vector<144x128xf32>
    %34 = arith.addf %28, %33 : vector<144x128xf32>
    %c0_38 = arith.constant 0 : index
    %c0_39 = arith.constant 0 : index
    %c36 = arith.constant 36 : index
    %c0_40 = arith.constant 0 : index
    %35 = vector.load %arg2[%c0_38, %c0_39, %c36, %c0_40] : memref<1x1x184x4xbf16, #tpu.memory_space<vmem>>, vector<1x1x144x4xbf16>
    %36 = vector.shape_cast %35 : vector<1x1x144x4xbf16> to vector<144x4xbf16>
    %c6 = arith.constant 6 : index
    %c0_41 = arith.constant 0 : index
    %c0_42 = arith.constant 0 : index
    %37 = vector.load %arg3[%c6, %c0_41, %c0_42] : memref<9x4x128xbf16, #tpu.memory_space<vmem>>, vector<1x4x128xbf16>
    %38 = vector.shape_cast %37 : vector<1x4x128xbf16> to vector<4x128xbf16>
    %cst_43 = arith.constant dense<0.000000e+00> : vector<144x128xf32>
    %39 = tpu.matmul %36, %38, %cst_43 {dimension_numbers = #tpu.dot_dimension_numbers<[1], [0], [0], [1], [0, 0, 1, 1], [], []>} : vector<144x4xbf16>, vector<4x128xbf16>, vector<144x128xf32> -> vector<144x128xf32>
    %40 = arith.addf %34, %39 : vector<144x128xf32>
    %c0_44 = arith.constant 0 : index
    %c0_45 = arith.constant 0 : index
    %c37 = arith.constant 37 : index
    %c0_46 = arith.constant 0 : index
    %41 = vector.load %arg2[%c0_44, %c0_45, %c37, %c0_46] : memref<1x1x184x4xbf16, #tpu.memory_space<vmem>>, vector<1x1x144x4xbf16>
    %42 = vector.shape_cast %41 : vector<1x1x144x4xbf16> to vector<144x4xbf16>
    %c7 = arith.constant 7 : index
    %c0_47 = arith.constant 0 : index
    %c0_48 = arith.constant 0 : index
    %43 = vector.load %arg3[%c7, %c0_47, %c0_48] : memref<9x4x128xbf16, #tpu.memory_space<vmem>>, vector<1x4x128xbf16>
    %44 = vector.shape_cast %43 : vector<1x4x128xbf16> to vector<4x128xbf16>
    %cst_49 = arith.constant dense<0.000000e+00> : vector<144x128xf32>
    %45 = tpu.matmul %42, %44, %cst_49 {dimension_numbers = #tpu.dot_dimension_numbers<[1], [0], [0], [1], [0, 0, 1, 1], [], []>} : vector<144x4xbf16>, vector<4x128xbf16>, vector<144x128xf32> -> vector<144x128xf32>
    %46 = arith.addf %40, %45 : vector<144x128xf32>
    %c0_50 = arith.constant 0 : index
    %c0_51 = arith.constant 0 : index
    %c38 = arith.constant 38 : index
    %c0_52 = arith.constant 0 : index
    %47 = vector.load %arg2[%c0_50, %c0_51, %c38, %c0_52] : memref<1x1x184x4xbf16, #tpu.memory_space<vmem>>, vector<1x1x144x4xbf16>
    %48 = vector.shape_cast %47 : vector<1x1x144x4xbf16> to vector<144x4xbf16>
    %c8 = arith.constant 8 : index
    %c0_53 = arith.constant 0 : index
    %c0_54 = arith.constant 0 : index
    %49 = vector.load %arg3[%c8, %c0_53, %c0_54] : memref<9x4x128xbf16, #tpu.memory_space<vmem>>, vector<1x4x128xbf16>
    %50 = vector.shape_cast %49 : vector<1x4x128xbf16> to vector<4x128xbf16>
    %cst_55 = arith.constant dense<0.000000e+00> : vector<144x128xf32>
    %51 = tpu.matmul %48, %50, %cst_55 {dimension_numbers = #tpu.dot_dimension_numbers<[1], [0], [0], [1], [0, 0, 1, 1], [], []>} : vector<144x4xbf16>, vector<4x128xbf16>, vector<144x128xf32> -> vector<144x128xf32>
    %52 = arith.addf %46, %51 : vector<144x128xf32>
    %c0_56 = arith.constant 0 : index
    %c0_57 = arith.constant 0 : index
    %53 = vector.load %arg4[%c0_56, %c0_57] : memref<1x128xf32, #tpu.memory_space<vmem>>, vector<1x128xf32>
    %54 = vector.broadcast %53 : vector<1x128xf32> to vector<144x128xf32>
    %55 = arith.addf %52, %54 : vector<144x128xf32>
    %c0_58 = arith.constant 0 : index
    %c0_59 = arith.constant 0 : index
    %c0_60 = arith.constant 0 : index
    %56 = vector.load %arg5[%c0_58, %c0_59, %c0_60] : memref<1x144x128xf32, #tpu.memory_space<vmem>>, vector<1x144x128xf32>
    %57 = vector.shape_cast %56 : vector<1x144x128xf32> to vector<144x128xf32>
    %58 = vector.shape_cast %55 : vector<144x128xf32> to vector<1x144x128xf32>
    tpu.vector_store %arg5[%c0_58, %c0_59, %c0_60], %58 {strides = array<i32>} : memref<1x144x128xf32, #tpu.memory_space<vmem>>, vector<1x144x128xf32>,
    return
  }
  func.func @transform_0(%arg0: i32, %arg1: i32) -> (i32, i32, i32, i32) {
    %c0_i32 = arith.constant 0 : i32
    %c0_i32_0 = arith.constant 0 : i32
    %c0_i32_1 = arith.constant 0 : i32
    return %arg0, %arg1, %c0_i32, %c0_i32_0 : i32, i32, i32, i32
  }
  func.func @transform_1(%arg0: i32, %arg1: i32) -> (i32, i32, i32) {
    %c0_i32 = arith.constant 0 : i32
    %c0_i32_0 = arith.constant 0 : i32
    %c0_i32_1 = arith.constant 0 : i32
    %c0_i32_2 = arith.constant 0 : i32
    return %c0_i32, %c0_i32_0, %c0_i32_1 : i32, i32, i32
  }
  func.func @transform_2(%arg0: i32, %arg1: i32) -> (i32, i32) {
    %c0_i32 = arith.constant 0 : i32
    %c0_i32_0 = arith.constant 0 : i32
    %c0_i32_1 = arith.constant 0 : i32
    return %c0_i32, %c0_i32_0 : i32, i32
  }
  func.func @transform_3(%arg0: i32, %arg1: i32) -> (i32, i32, i32) {
    %c0_i32 = arith.constant 0 : i32
    %c0_i32_0 = arith.constant 0 : i32
    return %arg0, %arg1, %c0_i32 : i32, i32, i32
  }
}

</mosaic_0001>

<bundles_post_ra>
// kernel: weight_norm_conv2d.1
= control target key start
LH: loop header
LB: loop body
LE: loop exit
PB: predicated region body
PF: predicated region fallthrough
CT: control target
= control target key end

     0   :  { %s4369_s0 = inlined_call_operand.hbm [shape: bf16[2,2,184,4], index: 0, kind: input, shape index: {}]   ;;  %s4370_s1 = inlined_call_operand.hbm [shape: bf16[9,4,128], index: 1, kind: input, shape index: {}]   ;;  %s4371_s2 = inlined_call_operand.hbm [shape: f32[1,128], index: 2, kind: input, shape index: {}]   ;;  %s4372_s3 = inlined_call_operand.hbm [shape: f32[2,288,128], index: 3, kind: output, shape index: {}]  }
   0x1   :  { %4380 = sst [smem:[#allocation15_spill]] %s4370_s1 }
   0x2   :  { %4381 = sst [smem:[#allocation16_spill]] %s4371_s2 }
   0x3   :  { %8 = vsyncpa [#allocation3], 0 }
   0x4   :  { %10 = vsyncpa [#allocation3 + $0x1], 0 }
   0x5   :  { %11 = vsyncpa [#allocation6], 0 }
   0x6   :  { %12 = vsyncpa [#allocation4], 0 }
   0x7   :  { %14 = vsyncpa [#allocation4 + $0x1], 0  ;;  %s3265_s12 = smov 0   ;;  %s3267_s13 = smov 0  }
   0x8   :  { %s3269_s14 = smov 0   ;;  %s3271_s15 = smov 0  }
   0x9   :  { %s3273_s16 = smov 0   ;;  %s3275_s17 = smov 0  }
   0xa   :  { %s3277_s18 = smov 0   ;;  %s3279_s19 = smov 0  }
   0xb LB: > { %4382 = sst [smem:[#allocation12_spill]] %s3223_s17  ;;  %s2331_s20 = sadd.s32 4294967295, %s3231_s19   ;;  %s3231_s19 = sphi %s3279_s19, %s20_s19   ;;  %s3227_s18 = sphi %s3277_s18, %s4408_s18   ;;  %s3223_s17 = sphi %s3275_s17, %s4402_s17   ;;  %s3219_s16 = sphi %s3273_s16, %s4407_s16   ;;  %s3215_s15 = sphi %s3271_s15, %s4401_s15   ;;  %s3211_s14 = sphi %s3269_s14, %s4406_s14   ;;  %s3207_s13 = sphi %s3267_s13, %s4405_s13   ;;  %s3203_s12 = sphi %s3265_s12, %s4404_s12  }
   0xc   : > { %s2332_s21 = sadd.s32 4294967294, %s3231_s19   ;;  %p54_p0 = scmp.ne.s32.totalorder %s3207_s13, %s3203_s12 }
   0xd   : > { %p3309_p1 = scmp.eq.s32.totalorder %s2331_s20, 0  ;;  %p3313_p2 = scmp.eq.s32.totalorder %s2331_s20, 3 }
   0xe   : > { %p128_p3 = scmp.eq.s32.totalorder %s2332_s21, 3  ;;  %p2333_p5 = scmp.ge.s32.totalorder %s3231_s19, 1 }
   0xf   : > { %s4383_s22 = scalar_select %p3309_p1, 1, 0 }
  0x10   : > { %s4384_s23 = scalar_select %p3313_p2, 1, 0 }
  0x11   : > { %p3319_p4 = por %p3309_p1, %p54_p0  ;;  %p3324_p6 = por %p128_p3, %p54_p0 }
  0x12   : > { %p135_p7 = scmp.lt.s32.totalorder %s3231_s19, 5  ;;  %s3233_s27 = smov [#allocation5]  }
  0x13   : > { %s4385_s24 = scalar_select %p3319_p4, 1, 0 }
  0x14   : > { %s4386_s25 = scalar_select %p3324_p6, 1, 0 }
  0x15   : > { %p3329_p8 = pnand %p2333_p5, %p135_p7  ;;  %s147_s28 = sshll.u32 %s3233_s27, 4  ;;  %s148_s28 = int_to_ptr.vmem [resolvable:$true] %s147_s28 }
  0x16   : > { %s3234_s30 = smov [#allocation7]   ;;  %s4389_s1 = sld [smem:[#allocation15_spill]] }
  0x17   : > { %s4387_s26 = scalar_select %p3329_p8, 1, 0 }
  0x18   : > { %p2913_p9 = pneg %p3329_p8  ;;  %s161_s4 = sshll.u32 %s3234_s30, 4  ;;  %s3341_s4 = int_to_ptr.vmem [resolvable:$true] %s161_s4 }
  0x1a   : > { %p3337_p10 = pnand %p2913_p9, %p3309_p1 }
  0x1c   : > { %s3043_s7 = scalar_lea.hbm %s4389_s1, 288  ;;  %p3045_p12 = pneg %p3337_p10 }
  0x1d   : > { %p3044_p11 = scmp.ne.s32.totalorder %s4389_s1, %s3043_s7  ;;  %p3050_p3 = scmp.lt.u32.totalorder %s3043_s7, %s4389_s1 }
  0x1f   : > { %p3046_p13 = pnand %p3045_p12, %p3044_p11 }
  0x21   : > { %p3047_p0 = pneg %p3046_p13 }
  0x23   : > { %p3052_p5 = pnand %p3050_p3, %p3047_p0 }
  0x25   : > { %3055 = shalt.err (!%p3052_p5)
}
  0x26   : > { %s3056_s20 = scalar_lea.vmem %s148_s28, 288  ;;  %p3064_p1 = scmp.lt.s32.totalorder %s148_s28, %s148_s28 }
  0x27   : > { %p3057_p7 = scmp.ne.s32.totalorder %s148_s28, %s3056_s20  ;;  %p3065_p4 = scmp.lt.s32.totalorder %s3056_s20, %s3056_s20 }
  0x29   : > { %p3059_p9 = pnand %p3057_p7, %p3045_p12  ;;  %p3066_p8 = por %p3065_p4, %p3064_p1 }
  0x2b   : > { %p3060_p6 = pneg %p3059_p9 }
  0x2d   : > { %p3067_p2 = pnand %p3066_p8, %p3060_p6 }
  0x2f   : > { %3070 = shalt.err (!%p3067_p2)
}
  0x30   : > { %s3235_s21 = smov 32   ;;  %s3236_s27 = smov 2  }
  0x31   : > { %2916 = dma.hbm_to_vmem [thread:$0]  (!%p3337_p10), %s4389_s1, 288, %s148_s28, [#allocation6], %s3235_s21, %s3235_s21, %s3236_s27  }
  0x32   : > { %s4390_s2 = sld [smem:[#allocation16_spill]] }
  0x38   : > { %s3071_s8 = scalar_lea.hbm %s4390_s2, 16 }
  0x39   : > { %p3072_p11 = scmp.ne.s32.totalorder %s4390_s2, %s3071_s8  ;;  %p3078_p4 = scmp.lt.u32.totalorder %s3071_s8, %s4390_s2 }
  0x3b   : > { %p3074_p1 = pnand %p3072_p11, %p3045_p12 }
  0x3d   : > { %p3075_p2 = pneg %p3074_p1 }
  0x3f   : > { %p3080_p6 = pnand %p3078_p4, %p3075_p2 }
  0x41   : > { %3083 = shalt.err (!%p3080_p6)
}
  0x42   : > { %s3084_s28 = scalar_lea.vmem %s3341_s4, 16  ;;  %s3091_s21 = scalar_lea.vmem %s3341_s4, 32 }
  0x43   : > { %p3085_p8 = scmp.ne.s32.totalorder %s3341_s4, %s3084_s28  ;;  %p3092_p3 = scmp.lt.s32.totalorder %s3341_s4, %s3341_s4 }
  0x44   : > { %p3093_p5 = scmp.lt.s32.totalorder %s3091_s21, %s3084_s28 }
  0x45   : > { %p3087_p13 = pnand %p3085_p8, %p3045_p12 }
  0x46   : > { %p3094_p7 = por %p3093_p5, %p3092_p3 }
  0x47   : > { %p3088_p0 = pneg %p3087_p13 }
  0x49   : > { %p3095_p9 = pnand %p3094_p7, %p3088_p0 }
  0x4b   : > { %3098 = shalt.err (!%p3095_p9)
}
  0x4c   : > { %2919 = dma.hbm_to_vmem [thread:$0]  (!%p3337_p10), %s4390_s2, 16, %s3341_s4, [#allocation6]  }
  0x4d   : > { %s29_s5 = sadd.s32 1, %s3223_s17  ;;  %s32_s6 = sadd.s32 1, %s3227_s18 }
  0x4e   : > { %p30_p12 = scmp.ge.s32.totalorder %s29_s5, 2  ;;  %s41_s29 = sadd.s32 1, %s3211_s14 }
  0x4f   : > { %p48_p11 = scmp.ne.s32.totalorder %s3211_s14, %s3207_s13  ;;  %p49_p1 = scmp.eq.s32.totalorder %s3231_s19, 0 }
  0x50   : > { %s4410_s5 = smov (%p30_p12, %s29_s5), 0  ;;  %s4412_s6 = smov (!%p30_p12, %s32_s6), %s3227_s18 }
  0x51   : > { %4391 = sst [smem:[#allocation13_spill]] %s4410_s5  ;;  %s37_s7 = ssub.s32 %s3223_s17, %s4410_s5 }
  0x52   : > { %p3402_p2 = por %p49_p1, %p48_p11  ;;  %p34_p10 = scmp.ge.s32.totalorder %s4412_s6, 2 }
  0x53   : > { %p4393_p4 = scmp.ne.s32.totalorder %s4384_s23, 0  ;;  %p2930_p8 = scmp.lt.s32.totalorder %s3231_s19, 4 }
  0x54   : > { %s172_s9 = sand.u32 1, %s3211_s14   ;;  %s4414_s6 = smov (%p34_p10, %s4412_s6), 0 }
  0x55   : > { %p3408_p6 = por %p4393_p4, %p48_p11  ;;  %4395 = sst [smem:[#allocation14_spill]] %s4414_s6 }
  0x56   : > { %s2895_s10 = smul.u32 92, %s172_s9  ;;  %s36_s11 = ssub.s32 %s3227_s18, %s4414_s6 }
  0x57   : > { %s2896_s20 = smul.u32 23, %s3223_s17  ;;  %s38_s28 = sor.u32 %s37_s7, %s36_s11 }
  0x58   : > { %p39_p13 = scmp.eq.s32.totalorder %s38_s28, 0  ;;  %s2897_s21 = smul.u32 46, %s3227_s18 }
  0x59   : > { %s176_s27 = scalar_lea.vmem [#allocation2], %s2895_s10  ;;  %p3422_p0 = pnand %p2930_p8, %p3402_p2 }
  0x5a   : > { %s185_s30 = sshll.u32 %s176_s27, 4  ;;  %s182_s2 = sadd.s32 %s2897_s21, %s2896_s20  ;;  %s3429_s30 = int_to_ptr.vmem [resolvable:$true] %s185_s30 }
  0x5b   : > { %s3427_s1 = scalar_select %p39_p13, %s3211_s14, %s41_s29  }
  0x5c   : > { %s2337_s5 = sshll.u32 %s182_s2, 6  ;;  %s3436_s8 = scalar_lea.sflag [#allocation3], %s172_s9 }
  0x5d   : > { %s3434_s7 = scalar_lea.hbm %s4369_s0, %s2337_s5  ;;  %p3101_p5 = pneg %p3422_p0 }
  0x5e   : > { %s3099_s10 = scalar_lea.hbm %s3434_s7, 1472  ;;  %s3104_s17 = scalar_lea.hbm %s4369_s0, 5888 }
  0x5f   : > { %p3100_p3 = scmp.ne.s32.totalorder %s3434_s7, %s3099_s10  ;;  %p3105_p12 = scmp.lt.u32.totalorder %s3434_s7, %s4369_s0 }
  0x60   : > { %p3106_p11 = scmp.lt.u32.totalorder %s3104_s17, %s3099_s10  ;;  %p3108_p2 = scmp.lt.u32.totalorder %s3099_s10, %s3434_s7 }
  0x61   : > { %p3102_p7 = pnand %p3101_p5, %p3100_p3 }
  0x62   : > { %p3107_p1 = por %p3106_p11, %p3105_p12 }
  0x63   : > { %p3103_p9 = pneg %p3102_p7 }
  0x64   : > { %p3109_p10 = por %p3108_p2, %p3107_p1 }
  0x66   : > { %p3110_p4 = pnand %p3109_p10, %p3103_p9 }
  0x68   : > { %3113 = shalt.err (!%p3110_p4)
}
  0x69   : > { %s3114_s9 = scalar_lea.vmem %s3429_s30, 1472  ;;  %s3237_s11 = smov [#allocation2]  }
  0x6a   : > { %p3115_p8 = scmp.ne.s32.totalorder %s3429_s30, %s3114_s9  ;;  %s3119_s20 = sshll.u32 %s3237_s11, 4  ;;  %s3120_s20 = int_to_ptr.vmem [resolvable:$false] %s3119_s20 }
  0x6b   : > { %s3121_s28 = scalar_lea.vmem %s3120_s20, 2944  ;;  %p3122_p7 = scmp.lt.s32.totalorder %s3429_s30, %s3120_s20 }
  0x6c   : > { %p3117_p13 = pnand %p3115_p8, %p3101_p5  ;;  %p3123_p12 = scmp.lt.s32.totalorder %s3121_s28, %s3114_s9 }
  0x6e   : > { %p3118_p3 = pneg %p3117_p13  ;;  %p3124_p11 = por %p3123_p12, %p3122_p7 }
  0x70   : > { %p3125_p1 = pnand %p3124_p11, %p3118_p3 }
  0x72   : > { %3128 = shalt.err (!%p3125_p1)
}
  0x73   : > { %s3238_s21 = smov 64   ;;  %s3239_s27 = smov 4  }
  0x74   : > { %2923 = dma.hbm_to_vmem [thread:$0]  (!%p3422_p0), %s3434_s7, 1472, %s3429_s30, %s3436_s8, %s3238_s21, %s3238_s21, %s3239_s27  }
  0x75   : > { %p4397_p5 = scmp.ne.s32.totalorder %s4387_s26, 0 }
  0x76   : > { %s3467_s10 = sand.u32 (!%p4397_p5), 1, %s3207_s13   ;;  %p4398_p9 = scmp.ne.s32.totalorder (!%p4397_p5), %s4385_s24, 0 }
  0x77   : > { %197 = sbr.rel (%p4397_p5) target bundleno = 694 (0x2b6), region = 32  ;;  %s200_s29 = scalar_lea.sflag (!%p4397_p5), [#allocation3], %s3467_s10 }
  0x78   : > { %s2898_s2 = smul.u32 (!%p4397_p5), 92, %s3467_s10 }
  0x7a   : > { %s3471_s17 = scalar_lea.vmem (!%p4397_p5), [#allocation2], %s2898_s2 }
  0x7e   : > { %3190 = dma.done.wait (%p4398_p9), %s200_s29, 1472  }
  0x7f   : > { %3192 = vsyncadd (%p4398_p9), %s200_s29, 4294965824  ;;  %p4399_p0 = scmp.ne.s32.totalorder %s4383_s22, 0 }
  0x81   : > { %3194 = dma.done.wait (%p4399_p0), [#allocation6], 304  }
  0x82   : > { %3196 = vsyncadd (%p4399_p0), [#allocation6], 4294966992  ;;  %v3240_v0 = vmov 0.0   ;;  %vm3241_vm0 = vmmov 0   ;;  %vm411_vm1 = vcmask 1041408   ;;  %v3496_v6 = vld [vmem:[%s3471_s17 + $0x8] sm:$0xff]  }
  0x83   : > { %2551 = vmatprep.subr.bf16.mxu0 %v3240_v0  ;;  %2893 = vmatprep.subr.bf16.mxu1 %v3240_v0  ;;  %v257_v1 = vld [vmem:[#allocation5 + $0x2] sm:$0x3]  ;;  %v236_v2 = vld [vmem:[%s3471_s17] sm:$0xf]  ;;  %v3489_v3 = vld [vmem:[%s3471_s17 + $0x4] sm:$0xf] }
  0x84   : > { %2553 = vmatprep.mubr.msk.bf16.mxu0 %vm3241_vm0, %v3240_v0  ;;  %2573 = vmatprep.mubr.msk.bf16.mxu1 %vm3241_vm0, %v3240_v0  ;;  %v413_v4 = vsel %vm411_vm1, %v257_v1, 0  ;;  %v3493_v5 = vcombine.low %v236_v2, %v3489_v3  ;;  %v315_v9 = vshll.u32 %v3496_v6, 16  ;;  %v3503_v10 = vld [vmem:[%s3471_s17 + $0x28] sm:$0xff]   ;;  %vm306_vm2 = vsmask.f32 7424  ;;  %v3507_v11 = vld [vmem:[%s3471_s17 + $0x30] sm:$0xff]  }
  0x85   : > { %2552 = vmatpush3.bf16.msra.mxu0 %v413_v4  ;;  %2894 = vmatpush3.bf16.msra.mxu1 %v413_v4  ;;  %v648_v12 = vld [vmem:[#allocation5 + $0x4] sm:$0x3]  ;;  %v347_v15 = vshll.u32 %v3503_v10, 16  ;;  %v351_v16 = vshrl.u32 %v3503_v10, 16  ;;  %v254_v17 = vld [vmem:[#allocation5] sm:$0x3] }
  0x86   : > { %2627 = vmatprep.subr.bf16.mxu0 %v3240_v0  ;;  %v308_v7 = vshrl.u32 %v3493_v5, 16  ;;  %v310_v8 = vshll.u32 %v3493_v5, 16  ;;  %2589 = vmatprep.subr.bf16.mxu1 %v3240_v0  ;;  %v317_v14 = vrot.slane %v315_v9, 1  ;;  %vm383_vm3 = vcmask 31744   ;;  %v3513_v19 = vld [vmem:[%s3471_s17 + $0x10] sm:$0xff]   ;;  %v3519_v23 = vld [vmem:[%s3471_s17 + $0x38] sm:$0xff]  }
  0x87   : > { %v355_v18 = vshll.u32 %v3507_v11, 16  ;;  %v319_v20 = vshrl.u32 %v3496_v6, 16  ;;  %v3516_v22 = vrot.slane %v347_v15, 1  ;;  %v700_v25 = vsel %vm411_vm1, %v648_v12, 0  ;;  %v3533_v35 = vld [vmem:[%s3471_s17 + $0x18] sm:$0xff]   ;;  %v3540_v38 = vld [vmem:[%s3471_s17 + $0x40] sm:$0xff]  }
  0x88   : > { %v312_v13 = vrot.slane %v310_v8, 1  ;;  %v323_v26 = vshll.u32 %v3513_v19, 16  ;;  %v359_v29 = vshrl.u32 %v3507_v11, 16  ;;  %v363_v30 = vshll.u32 %v3519_v23, 16  ;;  %v3554_v48 = vld [vmem:[%s3471_s17 + $0x20] sm:$0xff]   ;;  %s2899_s22 = smul.u32 144, %s3467_s10 }
  0x89   : > { %v357_v24 = vrot.slane %v355_v18, 1  ;;  %v353_v28 = vor.u32 %v351_v16, %v3516_v22  ;;  %v539_v31 = vsel %vm411_vm1, %v254_v17, 0  ;;  %v321_v33 = vor.u32 %v319_v20, %v317_v14  ;;  %v3017_v45 = vld [vmem:[%s3471_s17 + $0x48] ss:$0 sps:$4 sm:$0x11]   ;;  %s2214_s26 = smul.u32 18, %s3215_s15 }
  0x8a   : > { %v313_v21 = vor.u32 %v312_v13, %v308_v7  ;;  %v325_v34 = vrot.slane %v323_v26, 1  ;;  %v365_v37 = vrot.slane %v363_v30, 1  ;;  %v327_v40 = vshrl.u32 %v3513_v19, 16  ;;  %v646_v8 = vld [vmem:[%s3471_s17] sm:$0xe]  ;;  %s4255_s24 = scalar_lea.vmem [#allocation8], %s2899_s22 }
  0x8b   : > { %v358_v32 = vsel %vm306_vm2, %v353_v28, %v357_v24  ;;  %v361_v36 = vor.u32 %v359_v29, %v357_v24  ;;  %v331_v41 = vshll.u32 %v3533_v35, 16  ;;  %v367_v43 = vshrl.u32 %v3519_v23, 16  ;;  %v845_v12 = vld [vmem:[#allocation5 + $0x6] sm:$0x3]  ;;  %v826_v20 = vld [vmem:[%s3471_s17 + $0xc] sm:$0xf] }
  0x8c   : > { %v318_v27 = vsel %vm306_vm2, %v313_v21, %v317_v14  ;;  %2574 = vmatmul.mubr.msk.bf16.vlgmr.msra.gmra.mrb[0].mxu1 %vm383_vm3, %v358_v32  ;;  %v326_v39 = vsel %vm306_vm2, %v321_v33, %v325_v34  ;;  %v371_v44 = vshll.u32 %v3540_v38, 16  ;;  %v329_v46 = vor.u32 %v327_v40, %v325_v34  ;;  %v1315_v21 = vld [vmem:[%s3471_s17 + $0x8] sm:$0xc]  ;;  %v3614_v24 = vld [vmem:[%s3471_s17 + $0x10] sm:$0xff]   ;;  %v3622_v28 = vld [vmem:[%s3471_s17 + $0x18] sm:$0xff]   ;;  %s2900_s30 = smul.u32 36, %s3219_s16 }
  0x8d   : > { %2554 = vmatmul.mubr.msk.bf16.vlgmr.msra.gmra.mrb[0].mxu0 %vm383_vm3, %v318_v27  ;;  %2590 = vmatpush3.bf16.msra.mxu1 %v539_v31  ;;  %v366_v42 = vsel %vm306_vm2, %v361_v36, %v365_v37  ;;  %v333_v47 = vrot.slane %v331_v41, 1  ;;  %v369_v49 = vor.u32 %v367_v43, %v365_v37  ;;  %vm652_vm4 = vcmask 1046528   ;;  %v3641_v34 = vld [vmem:[%s3471_s17 + $0x20] sm:$0xff]   ;;  %v3657_v40 = vld [vmem:[%s3471_s17 + $0x28] sm:$0xff]   ;;  %s2222_s23 = sshll.u32 %s4255_s24, 4  ;;  %s2207_s6 = scalar_lea.sflag [#allocation4], %s3467_s10  ;;  %s4307_s23 = int_to_ptr.vmem [resolvable:$true] %s2222_s23 }
  0x8e   : > { %2628 = vmatpush3.bf16.msra.mxu0 %v700_v25  ;;  %2557 = vmatprep.mubr.msk.bf16.mxu0 %vm3241_vm0, %v3240_v0  ;;  %v373_v50 = vrot.slane %v371_v44, 1  ;;  %v668_v51 = vrot.slane %v3540_v38, 1  ;;  %v670_v52 = vrot.slane %v3017_v45, 1  ;;  %v335_v54 = vshrl.u32 %v3533_v35, 16  ;;  %v3673_v44 = vld [vmem:[%s3471_s17 + $0x30] sm:$0xff]   ;;  %s2219_s15 = sadd.s32 %s2900_s30, %s2214_s26  ;;  %s3129_s9 = scalar_lea.vmem %s4307_s23, 2304 }
  0x8f   : > { %2703 = vmatprep.subr.bf16.mxu0 %v3240_v0  ;;  %2577 = vmatprep.mubr.msk.bf16.mxu1 %vm3241_vm0, %v3240_v0  ;;  %v334_v53 = vsel %vm306_vm2, %v329_v46, %v333_v47  ;;  %v339_v55 = vshll.u32 %v3554_v48, 16  ;;  %v375_v58 = vshrl.u32 %v3540_v38, 16  ;;  %v379_v59 = vshll.u32 %v3017_v45, 16  ;;  %s2458_s7 = sshll.u32 %s2219_s15, 7  ;;  %p3130_p2 = scmp.ne.s32.totalorder %s4307_s23, %s3129_s9 }
  0x90   : > { %2665 = vmatprep.subr.bf16.mxu1 %v3240_v0  ;;  %v3566_v56 = vsel %vm652_vm4, %v668_v51, %v670_v52  ;;  %v374_v57 = vsel %vm306_vm2, %v369_v49, %v373_v50  ;;  %v337_v60 = vor.u32 %v335_v54, %v333_v47  ;;  %v343_v2 = vshrl.u32 %v3554_v48, 16  ;;  %v825_v49 = vld [vmem:[%s3471_s17 + $0x8] sm:$0xe]  ;;  %s4314_s5 = scalar_lea.hbm %s4372_s3, %s2458_s7  ;;  %s3242_s11 = smov [#allocation8]  }
  0x91   : > { %v341_v61 = vrot.slane %v339_v55, 1  ;;  %v377_v62 = vor.u32 %v375_v58, %v373_v50  ;;  %v381_v63 = vrot.slane %v379_v59, 1  ;;  %v2369_v13 = vcombine.low %v646_v8, %v3489_v3  ;;  %v1068_v3 = vld [vmem:[#allocation5 + $0x8] sm:$0x3]  ;;  %p3131_p10 = pnand %p3130_p2, %p3408_p6  ;;  %s3133_s20 = sshll.u32 %s3242_s11, 4  ;;  %s3134_s20 = int_to_ptr.vmem [resolvable:$false] %s3133_s20 }
  0x92   : > { %v941_v14 = vsel %vm411_vm1, %v845_v12, 0  ;;  %v654_v16 = vrot.slane %v3496_v6, 1  ;;  %v1190_v18 = vsel %vm411_vm1, %v1068_v3, 0  ;;  %v2408_v25 = vcombine.low %v1315_v21, %v826_v20  ;;  %s3135_s28 = scalar_lea.vmem %s3134_s20, 4608  ;;  %p3136_p8 = scmp.lt.s32.totalorder %s4307_s23, %s3134_s20 }
  0x93   : > { %v342_v1 = vsel %vm306_vm2, %v337_v60, %v341_v61  ;;  %v382_v4 = vsel %vm306_vm2, %v377_v62, %v381_v63  ;;  %v345_v7 = vor.u32 %v343_v2, %v341_v61  ;;  %v653_v15 = vrot.slane %v2369_v13, 1  ;;  %p3132_p4 = pneg %p3131_p10  ;;  %p3137_p13 = scmp.lt.s32.totalorder %s3135_s28, %s3129_s9 }
  0x94   : > { %2578 = vmatmul.mubr.msk.bf16.gmra.mrb[4].mxu1 %vm383_vm3, %v366_v42  ;;  %v1322_v26 = vrot.slane %v2408_v25, 2  ;;  %v1323_v27 = vrot.slane %v3614_v24, 2  ;;  %vm1321_vm5 = vcmask 1045504   ;;  %v1325_v30 = vrot.slane %v3622_v28, 2 }
  0x95   : > { %2558 = vmatmul.mubr.msk.bf16.gmra.mrb[4].mxu0 %vm383_vm3, %v326_v39  ;;  %2581 = vmatprep.mubr.msk.bf16.mxu1 %vm3241_vm0, %v3240_v0  ;;  %v350_v9 = vsel %vm306_vm2, %v345_v7, %v3516_v22  ;;  %v655_v17 = vsel %vm652_vm4, %v653_v15, %v654_v16  ;;  %v660_v33 = vrot.slane %v3554_v48, 1  ;;  %v662_v39 = vrot.slane %v3503_v10, 1  ;;  %v1514_v7 = vld [vmem:[#allocation5 + $0xc] sm:$0x3]  ;;  %p3138_p3 = por %p3137_p13, %p3136_p8 }
  0x96   : > { %2561 = vmatprep.mubr.msk.bf16.mxu0 %vm3241_vm0, %v3240_v0  ;;  %v3625_v29 = vsel %vm1321_vm5, %v1322_v26, %v1323_v27  ;;  %v3634_v32 = vsel %vm1321_vm5, %v1323_v27, %v1325_v30  ;;  %v664_v43 = vrot.slane %v3507_v11, 1  ;;  %v1331_v45 = vrot.slane %v3673_v44, 2 }
  0x97   : > { %v663_v41 = vsel %vm652_vm4, %v660_v33, %v662_v39  ;;  %v2379_v50 = vcombine.low %v825_v49, %v826_v20  ;;  %v1082_v54 = vshrl.u32 %v3614_v24, 16  ;;  %v1091_v2 = vshrl.u32 %v3622_v28, 16  ;;  %p3139_p7 = pnand %p3138_p3, %p3132_p4 }
  0x98   : > { %v665_v46 = vsel %vm652_vm4, %v662_v39, %v664_v43  ;;  %vm1072_vm6 = vsmask.f32 6400  ;;  %v1610_v13 = vsel %vm411_vm1, %v1514_v7, 0  ;;  %v1103_v3 = vshll.u32 %v3641_v34, 16 }
  0x99   : > { %v1074_v52 = vshrl.u32 %v2379_v50, 16  ;;  %v894_v55 = vrot.slane %v2379_v50, 1  ;;  %v1084_v60 = vrot.slane %v1082_v54, 1  ;;  %v1112_v25 = vshll.u32 %v3657_v40, 16 }
  0x9a   : > { %v1105_v20 = vrot.slane %v1103_v3, 2  ;;  %v901_v26 = vrot.slane %v3657_v40, 1  ;;  %v3808_v7 = vld [vmem:[%s3471_s17 + $0x50] ss:$0 sps:$4 sm:$0x33]   ;;  %vm1990_vm8 = vcmask 1044480  }
  0x9b   : > { %v1076_v58 = vrot.slane %v1074_v52, 1  ;;  %vm1741_vm7 = vsmask.f32 5376 }
  0x9c   : > { %2582 = vmatmul.mubr.msk.bf16.gmra.mrb[8].mxu1 %vm383_vm3, %v374_v57  ;;  %v1317_v57 = vld [vmem:[#allocation5 + $0xa] sm:$0x3] }
  0x9d   : > { %2562 = vmatmul.mubr.msk.bf16.gmra.mrb[8].mxu0 %vm383_vm3, %v334_v53  ;;  %2585 = vmatprep.mubr.msk.bf16.mxu1 %vm3241_vm0, %v3240_v0  ;;  %v1077_v53 = vshll.u32 %v2379_v50, 16  ;;  %v1369_v63 = vsel %vm411_vm1, %v1317_v57, 0 }
  0x9e   : > { %2565 = vmatprep.mubr.msk.bf16.mxu0 %vm3241_vm0, %v3240_v0 }
  0x9f   : > { %v1079_v59 = vrot.slane %v1077_v53, 2  ;;  %v3781_v53 = vld [vmem:[%s3471_s17 + $0x40] sm:$0xff]  }
  0xa4   : > { %2586 = vmatmul.mubr.msk.bf16.gmra.mrb[12].mxu1 %vm383_vm3, %v382_v4  ;;  %v1094_v4 = vshll.u32 %v3622_v28, 16 }
  0xa5   : > { %2566 = vmatmul.mubr.msk.bf16.gmra.mrb[12].mxu0 %vm383_vm3, %v342_v1  ;;  %2591 = vmatprep.mubr.msk.bf16.mxu1 %vm3241_vm0, %v3240_v0 }
  0xa6   : > { %2569 = vmatprep.mubr.msk.bf16.mxu0 %vm3241_vm0, %v3240_v0  ;;  %v1096_v12 = vrot.slane %v1094_v4, 2 }
  0xac   : > { %2592 = vmatmul.mubr.msk.bf16.vlgmr.msra.gmra.mrb[16].mxu1 %vm383_vm3, %v3493_v5  ;;  %v656_v5 = vrot.slane %v3513_v19, 1 }
  0xad   : > { %2570 = vmatmul.mubr.msk.bf16.gmra.mrb[16].mxu0 %vm383_vm3, %v350_v9  ;;  %2666 = vmatpush3.bf16.msra.mxu1 %v941_v14  ;;  %v1093_v9 = vrot.slane %v1091_v2, 1 }
  0xae   : > { %2629 = vmatprep.mubr.msk.bf16.mxu0 %vm3241_vm0, %v3240_v0  ;;  %2595 = vmatprep.mubr.msk.bf16.mxu1 %vm3241_vm0, %v3240_v0  ;;  %v657_v22 = vsel %vm652_vm4, %v654_v16, %v656_v5  ;;  %v1100_v16 = vshrl.u32 %v3641_v34, 16 }
  0xaf   : > { %2741 = vmatprep.subr.bf16.mxu1 %v3240_v0  ;;  %v1097_v15 = vor.u32 %v1096_v12, %v1093_v9  ;;  %v3028_v9 = vld [vmem:[%s3471_s17 + $0x50] ss:$0 sps:$4 sm:$0x11]  }
  0xb4   : > { %2596 = vmatmul.mubr.msk.bf16.gmra.mrb[20].mxu1 %vm383_vm3, %v3496_v6  ;;  %v658_v6 = vrot.slane %v3533_v35, 1 }
  0xb5   : > { %2630 = vmatmul.mubr.msk.bf16.vlgmr.msra.gmra.mrb[20].mxu0 %vm383_vm3, %v655_v17  ;;  %2599 = vmatprep.mubr.msk.bf16.mxu1 %vm3241_vm0, %v3240_v0  ;;  %v899_v17 = vrot.slane %v3641_v34, 1 }
  0xb6   : > { %2704 = vmatpush3.bf16.msra.mxu0 %v1190_v18  ;;  %2633 = vmatprep.mubr.msk.bf16.mxu0 %vm3241_vm0, %v3240_v0  ;;  %v659_v31 = vsel %vm652_vm4, %v656_v5, %v658_v6  ;;  %v661_v36 = vsel %vm652_vm4, %v658_v6, %v660_v33  ;;  %v1102_v5 = vrot.slane %v1100_v16, 1  ;;  %v1118_v33 = vshrl.u32 %v3673_v44, 16 }
  0xb7   : > { %2779 = vmatprep.subr.bf16.mxu0 %v3240_v0 }
  0xb8   : > { %v1120_v39 = vrot.slane %v1118_v33, 1  ;;  %v3851_v33 = vld [vmem:[%s3471_s17 + $0x20] sm:$0xff]  }
  0xbc   : > { %2600 = vmatmul.mubr.msk.bf16.gmra.mrb[24].mxu1 %vm383_vm3, %v3513_v19  ;;  %v1327_v19 = vrot.slane %v3641_v34, 2  ;;  %v1121_v34 = vshll.u32 %v3673_v44, 16 }
  0xbd   : > { %2634 = vmatmul.mubr.msk.bf16.gmra.mrb[24].mxu0 %vm383_vm3, %v657_v22  ;;  %2603 = vmatprep.mubr.msk.bf16.mxu1 %vm3241_vm0, %v3240_v0  ;;  %v1106_v22 = vor.u32 %v1105_v20, %v1102_v5  ;;  %v1494_v20 = vld [vmem:[%s3471_s17 + $0x10] sm:$0xc] }
  0xbe   : > { %2637 = vmatprep.mubr.msk.bf16.mxu0 %vm3241_vm0, %v3240_v0  ;;  %v3650_v37 = vsel %vm1321_vm5, %v1325_v30, %v1327_v19  ;;  %v902_v30 = vsel %vm652_vm4, %v899_v17, %v901_v26 }
  0xbf   : > { %v1107_v27 = vsel %vm1072_vm6, %v1097_v15, %v1106_v22 }
  0xc4   : > { %2604 = vmatmul.mubr.msk.bf16.gmra.mrb[28].mxu1 %vm383_vm3, %v3533_v35  ;;  %v1329_v35 = vrot.slane %v3657_v40, 2 }
  0xc5   : > { %2638 = vmatmul.mubr.msk.bf16.gmra.mrb[28].mxu0 %vm383_vm3, %v659_v31  ;;  %2607 = vmatprep.mubr.msk.bf16.mxu1 %vm3241_vm0, %v3240_v0 }
  0xc6   : > { %2641 = vmatprep.mubr.msk.bf16.mxu0 %vm3241_vm0, %v3240_v0  ;;  %v3666_v42 = vsel %vm1321_vm5, %v1327_v19, %v1329_v35  ;;  %v3684_v47 = vsel %vm1321_vm5, %v1329_v35, %v1331_v45  ;;  %v903_v19 = vrot.slane %v3673_v44, 1 }
  0xc8   : > { %v904_v35 = vsel %vm652_vm4, %v901_v26, %v903_v19  ;;  %v3837_v26 = vld [vmem:[%s3471_s17 + $0x18] sm:$0xff]  }
  0xcc   : > { %2608 = vmatmul.mubr.msk.bf16.gmra.mrb[32].mxu1 %vm383_vm3, %v3554_v48  ;;  %v666_v48 = vrot.slane %v3519_v23, 1 }
  0xcd   : > { %2642 = vmatmul.mubr.msk.bf16.gmra.mrb[32].mxu0 %vm383_vm3, %v661_v36  ;;  %2611 = vmatprep.mubr.msk.bf16.mxu1 %vm3241_vm0, %v3240_v0 }
  0xce   : > { %2645 = vmatprep.mubr.msk.bf16.mxu0 %vm3241_vm0, %v3240_v0 }
  0xd4   : > { %2612 = vmatmul.mubr.msk.bf16.gmra.mrb[36].mxu1 %vm383_vm3, %v3503_v10  ;;  %v667_v10 = vsel %vm652_vm4, %v664_v43, %v666_v48 }
  0xd5   : > { %2646 = vmatmul.mubr.msk.bf16.gmra.mrb[36].mxu0 %vm383_vm3, %v663_v41  ;;  %2615 = vmatprep.mubr.msk.bf16.mxu1 %vm3241_vm0, %v3240_v0  ;;  %v3767_v41 = vld [vmem:[%s3471_s17 + $0x38] sm:$0xff]  }
  0xd6   : > { %2649 = vmatprep.mubr.msk.bf16.mxu0 %vm3241_vm0, %v3240_v0 }
  0xdc   : > { %2616 = vmatmul.mubr.msk.bf16.gmra.mrb[40].mxu1 %vm383_vm3, %v3507_v11  ;;  %v669_v11 = vsel %vm652_vm4, %v666_v48, %v668_v51  ;;  %v895_v51 = vrot.slane %v3614_v24, 1  ;;  %v1130_v48 = vshll.u32 %v3767_v41, 16 }
  0xdd   : > { %2650 = vmatmul.mubr.msk.bf16.gmra.mrb[40].mxu0 %vm383_vm3, %v665_v46  ;;  %2619 = vmatprep.mubr.msk.bf16.mxu1 %vm3241_vm0, %v3240_v0  ;;  %v1127_v46 = vshrl.u32 %v3767_v41, 16 }
  0xde   : > { %2653 = vmatprep.mubr.msk.bf16.mxu0 %vm3241_vm0, %v3240_v0  ;;  %v896_v62 = vsel %vm652_vm4, %v894_v55, %v895_v51  ;;  %v1132_v50 = vrot.slane %v1130_v48, 2  ;;  %v1139_v55 = vshll.u32 %v3781_v53, 16 }
  0xe4   : > { %2620 = vmatmul.mubr.msk.bf16.gmra.mrb[44].mxu1 %vm383_vm3, %v3519_v23  ;;  %v1085_v23 = vshll.u32 %v3614_v24, 16  ;;  %v1109_v24 = vshrl.u32 %v3657_v40, 16  ;;  %v1123_v40 = vrot.slane %v1121_v34, 2 }
  0xe5   : > { %2654 = vmatmul.mubr.msk.bf16.gmra.mrb[44].mxu0 %vm383_vm3, %v667_v10  ;;  %2623 = vmatprep.mubr.msk.bf16.mxu1 %vm3241_vm0, %v3240_v0  ;;  %v905_v10 = vrot.slane %v3767_v41, 1 }
  0xe6   : > { %2657 = vmatprep.mubr.msk.bf16.mxu0 %vm3241_vm0, %v3240_v0  ;;  %v1087_v61 = vrot.slane %v1085_v23, 2  ;;  %v1111_v6 = vrot.slane %v1109_v24, 1  ;;  %v1124_v43 = vor.u32 %v1123_v40, %v1120_v39  ;;  %v1136_v23 = vshrl.u32 %v3781_v53, 16  ;;  %v1737_v24 = vld [vmem:[#allocation5 + $0xe] sm:$0x3]  ;;  %v3876_v40 = vld [vmem:[%s3471_s17 + $0x30] sm:$0xff]  }
  0xe7   : > { %v906_v52 = vsel %vm652_vm4, %v903_v19, %v905_v10 }
  0xe8   : > { %v1088_v1 = vor.u32 %v1087_v61, %v1084_v60  ;;  %v3795_v61 = vld [vmem:[%s3471_s17 + $0x48] sm:$0xff]  }
  0xea   : > { %v1098_v18 = vsel %vm1072_vm6, %v1088_v1, %v1097_v15  ;;  %v911_v15 = vrot.slane %v3028_v9, 1 }
  0xec   : > { %2624 = vmatmul.mubr.msk.bf16.gmra.mrb[48].mxu1 %vm383_vm3, %v3540_v38  ;;  %v1080_v38 = vor.u32 %v1079_v59, %v1076_v58  ;;  %v1138_v58 = vrot.slane %v1136_v23, 1  ;;  %v1141_v59 = vrot.slane %v1139_v55, 2 }
  0xed   : > { %2658 = vmatmul.mubr.msk.bf16.gmra.mrb[48].mxu0 %vm383_vm3, %v669_v11  ;;  %2667 = vmatprep.mubr.msk.bf16.mxu1 %vm3241_vm0, %v3240_v0  ;;  %v1129_v11 = vrot.slane %v1127_v46, 1 }
  0xee   : > { %2661 = vmatprep.mubr.msk.bf16.mxu0 %vm3241_vm0, %v3240_v0  ;;  %v1089_v8 = vsel %vm1072_vm6, %v1080_v38, %v1088_v1  ;;  %v1148_v38 = vshll.u32 %v3795_v61, 16  ;;  %v909_v1 = vrot.slane %v3795_v61, 1 }
  0xef   : > { %v1133_v54 = vor.u32 %v1132_v50, %v1129_v11 }
  0xf1   : > { %v1134_v57 = vsel %vm1072_vm6, %v1124_v43, %v1133_v54 }
  0xf4   : > { %2668 = vmatmul.mubr.msk.bf16.vlgmr.msra.gmra.mrb[52].mxu1 %vm383_vm3, %v896_v62  ;;  %v1142_v62 = vor.u32 %v1141_v59, %v1138_v58  ;;  %v1335_v58 = vrot.slane %v3781_v53, 2 }
  0xf5   : > { %2662 = vmatmul.mubr.msk.bf16.gmra.mrb[52].mxu0 %vm383_vm3, %v3566_v56  ;;  %2742 = vmatpush3.bf16.msra.mxu1 %v1369_v63  ;;  %v897_v56 = vrot.slane %v3622_v28, 1  ;;  %v1114_v28 = vrot.slane %v1112_v25, 2  ;;  %v1145_v63 = vshrl.u32 %v3795_v61, 16 }
  0xf6   : > { %2705 = vmatprep.mubr.msk.bf16.mxu0 %vm3241_vm0, %v3240_v0  ;;  %2671 = vmatprep.mubr.msk.bf16.mxu1 %vm3241_vm0, %v3240_v0  ;;  %v1143_v2 = vsel %vm1072_vm6, %v1133_v54, %v1142_v62 }
  0xf7   : > { %2817 = vmatprep.subr.bf16.mxu1 %v3240_v0  ;;  %v898_v14 = vsel %vm652_vm4, %v895_v51, %v897_v56  ;;  %v900_v21 = vsel %vm652_vm4, %v897_v56, %v899_v17  ;;  %v1115_v31 = vor.u32 %v1114_v28, %v1111_v6  ;;  %v907_v51 = vrot.slane %v3781_v53, 1 }
  0xf8   : > { %v1147_v4 = vrot.slane %v1145_v63, 1  ;;  %v1150_v56 = vrot.slane %v1148_v38, 2  ;;  %v1564_v28 = vrot.slane %v3837_v26, 2 }
  0xf9   : > { %v1116_v36 = vsel %vm1072_vm6, %v1106_v22, %v1115_v31  ;;  %v1125_v49 = vsel %vm1072_vm6, %v1115_v31, %v1124_v43  ;;  %v908_v60 = vsel %vm652_vm4, %v905_v10, %v907_v51  ;;  %v3888_v43 = vld [vmem:[%s3471_s17 + $0x38] sm:$0xff]  }
  0xfa   : > { %v1151_v12 = vor.u32 %v1150_v56, %v1147_v4  ;;  %v1572_v46 = vrot.slane %v3888_v43, 2 }
  0xfc   : > { %2672 = vmatmul.mubr.msk.bf16.gmra.mrb[56].mxu1 %vm383_vm3, %v898_v14  ;;  %v1157_v14 = vshll.u32 %v3808_v7, 16  ;;  %v1152_v16 = vsel %vm1072_vm6, %v1142_v62, %v1151_v12  ;;  %v3930_v62 = vld [vmem:[%s3471_s17 + $0x48] sm:$0xff]  }
  0xfd   : > { %2706 = vmatmul.mubr.msk.bf16.vlgmr.msra.gmra.mrb[56].mxu0 %vm383_vm3, %v1089_v8  ;;  %2675 = vmatprep.mubr.msk.bf16.mxu1 %vm3241_vm0, %v3240_v0  ;;  %v910_v8 = vsel %vm652_vm4, %v907_v51, %v909_v1  ;;  %v1576_v53 = vrot.slane %v3930_v62, 2 }
  0xfe   : > { %2780 = vmatpush3.bf16.msra.mxu0 %v1610_v13  ;;  %2709 = vmatprep.mubr.msk.bf16.mxu0 %vm3241_vm0, %v3240_v0  ;;  %v1154_v13 = vshrl.u32 %v3808_v7, 16  ;;  %v1159_v17 = vrot.slane %v1157_v14, 2 }
  0xff   : > { %2855 = vmatprep.subr.bf16.mxu0 %v3240_v0 }
 0x100   : > { %v1156_v3 = vrot.slane %v1154_v13, 1 }
 0x102   : > { %v1160_v5 = vor.u32 %v1159_v17, %v1156_v3 }
 0x104   : > { %2676 = vmatmul.mubr.msk.bf16.gmra.mrb[60].mxu1 %vm383_vm3, %v900_v21  ;;  %v3828_v21 = vld [vmem:[%s3471_s17 + $0x14] sm:$0xf]  ;;  %v1161_v22 = vsel %vm1072_vm6, %v1151_v12, %v1160_v5 }
 0x105   : > { %2710 = vmatmul.mubr.msk.bf16.gmra.mrb[60].mxu0 %vm383_vm3, %v1098_v18  ;;  %2679 = vmatprep.mubr.msk.bf16.mxu1 %vm3241_vm0, %v3240_v0  ;;  %v912_v18 = vsel %vm652_vm4, %v909_v1, %v911_v15  ;;  %v3834_v25 = vcombine.low %v1494_v20, %v3828_v21  ;;  %v3951_v15 = vld [vmem:[%s3471_s17 + $0x50] sm:$0xff]   ;;  %v1339_v20 = vrot.slane %v3808_v7, 2 }
 0x106   : > { %2713 = vmatprep.mubr.msk.bf16.mxu0 %vm3241_vm0, %v3240_v0 }
 0x107   : > { %v1563_v6 = vrot.slane %v3834_v25, 2 }
 0x109   : > { %v1565_v31 = vsel %vm1321_vm5, %v1563_v6, %v1564_v28  ;;  %v1751_v6 = vshrl.u32 %v3837_v26, 16 }
 0x10c   : > { %2680 = vmatmul.mubr.msk.bf16.gmra.mrb[64].mxu1 %vm383_vm3, %v902_v30  ;;  %v1986_v30 = vld [vmem:[#allocation5 + $0x10] sm:$0x3] }
 0x10d   : > { %2714 = vmatmul.mubr.msk.bf16.gmra.mrb[64].mxu0 %vm383_vm3, %v1107_v27  ;;  %2683 = vmatprep.mubr.msk.bf16.mxu1 %vm3241_vm0, %v3240_v0  ;;  %v1859_v27 = vsel %vm411_vm1, %v1737_v24, 0  ;;  %v2038_v34 = vsel %vm411_vm1, %v1986_v30, 0  ;;  %v1743_v24 = vshrl.u32 %v3834_v25, 16 }
 0x10e   : > { %2717 = vmatprep.mubr.msk.bf16.mxu0 %vm3241_vm0, %v3240_v0 }
 0x114   : > { %2684 = vmatmul.mubr.msk.bf16.gmra.mrb[68].mxu1 %vm383_vm3, %v904_v35  ;;  %v1570_v35 = vrot.slane %v3876_v40, 2 }
 0x115   : > { %2718 = vmatmul.mubr.msk.bf16.gmra.mrb[68].mxu0 %vm383_vm3, %v1116_v36  ;;  %2687 = vmatprep.mubr.msk.bf16.mxu1 %vm3241_vm0, %v3240_v0  ;;  %v3864_v36 = vld [vmem:[%s3471_s17 + $0x28] sm:$0xff]  }
 0x116   : > { %2721 = vmatprep.mubr.msk.bf16.mxu0 %vm3241_vm0, %v3240_v0  ;;  %v1568_v39 = vrot.slane %v3864_v36, 2  ;;  %v1573_v50 = vsel %vm1321_vm5, %v1570_v35, %v1572_v46 }
 0x11c   : > { %2688 = vmatmul.mubr.msk.bf16.gmra.mrb[72].mxu1 %vm383_vm3, %v906_v52  ;;  %v3907_v52 = vld [vmem:[%s3471_s17 + $0x40] sm:$0xff]  }
 0x11d   : > { %2722 = vmatmul.mubr.msk.bf16.gmra.mrb[72].mxu0 %vm383_vm3, %v1125_v49  ;;  %2691 = vmatprep.mubr.msk.bf16.mxu1 %vm3241_vm0, %v3240_v0  ;;  %v1574_v51 = vrot.slane %v3907_v52, 2 }
 0x11e   : > { %2725 = vmatprep.mubr.msk.bf16.mxu0 %vm3241_vm0, %v3240_v0 }
 0x11f   : > { %v1577_v14 = vsel %vm1321_vm5, %v1574_v51, %v1576_v53 }
 0x124   : > { %2692 = vmatmul.mubr.msk.bf16.gmra.mrb[76].mxu1 %vm383_vm3, %v908_v60  ;;  %v1575_v60 = vsel %vm1321_vm5, %v1572_v46, %v1574_v51  ;;  %v1753_v46 = vrot.slane %v1751_v6, 2  ;;  %v1760_v51 = vshrl.u32 %v3851_v33, 16 }
 0x125   : > { %2726 = vmatmul.mubr.msk.bf16.gmra.mrb[76].mxu0 %vm383_vm3, %v1134_v57  ;;  %2695 = vmatprep.mubr.msk.bf16.mxu1 %vm3241_vm0, %v3240_v0 }
 0x126   : > { %2729 = vmatprep.mubr.msk.bf16.mxu0 %vm3241_vm0, %v3240_v0 }
 0x12c   : > { %2696 = vmatmul.mubr.msk.bf16.gmra.mrb[80].mxu1 %vm383_vm3, %v910_v8  ;;  %v1337_v8 = vrot.slane %v3795_v61, 2  ;;  %v1578_v61 = vrot.slane %v3951_v15, 2 }
 0x12d   : > { %2730 = vmatmul.mubr.msk.bf16.gmra.mrb[80].mxu0 %vm383_vm3, %v1143_v2  ;;  %2699 = vmatprep.mubr.msk.bf16.mxu1 %vm3241_vm0, %v3240_v0 }
 0x12e   : > { %2733 = vmatprep.mubr.msk.bf16.mxu0 %vm3241_vm0, %v3240_v0  ;;  %v1579_v7 = vsel %vm1321_vm5, %v1576_v53, %v1578_v61 }
 0x134   : > { %2700 = vmatmul.mubr.msk.bf16.gmra.mrb[84].mxu1 %vm383_vm3, %v912_v18  ;;  %v1338_v18 = vsel %vm1321_vm5, %v1335_v58, %v1337_v8 }
 0x135   : > { %2734 = vmatmul.mubr.msk.bf16.gmra.mrb[84].mxu0 %vm383_vm3, %v1152_v16  ;;  %2743 = vmatprep.mubr.msk.bf16.mxu1 %vm3241_vm0, %v3240_v0 }
 0x136   : > { %2737 = vmatprep.mubr.msk.bf16.mxu0 %vm3241_vm0, %v3240_v0 }
 0x13c   : > { %2744 = vmatmul.mubr.msk.bf16.vlgmr.msra.gmra.mrb[88].mxu1 %vm383_vm3, %v3625_v29  ;;  %v1566_v29 = vrot.slane %v3851_v33, 2 }
 0x13d   : > { %2738 = vmatmul.mubr.msk.bf16.gmra.mrb[88].mxu0 %vm383_vm3, %v1161_v22  ;;  %2818 = vmatpush3.bf16.msra.mxu1 %v1859_v27  ;;  %v1746_v27 = vshll.u32 %v3834_v25, 16  ;;  %v1745_v25 = vrot.slane %v1743_v24, 2  ;;  %v1769_v24 = vshrl.u32 %v3864_v36, 16 }
 0x13e   : > { %2781 = vmatprep.mubr.msk.bf16.mxu0 %vm3241_vm0, %v3240_v0  ;;  %2747 = vmatprep.mubr.msk.bf16.mxu1 %vm3241_vm0, %v3240_v0  ;;  %v1567_v19 = vsel %vm1321_vm5, %v1564_v28, %v1566_v29  ;;  %v1754_v28 = vshll.u32 %v3837_v26, 16 }
 0x144   : > { %2748 = vmatmul.mubr.msk.bf16.gmra.mrb[92].mxu1 %vm383_vm3, %v3634_v32  ;;  %v1569_v32 = vsel %vm1321_vm5, %v1566_v29, %v1568_v39  ;;  %v3040_v29 = vld [vmem:[%s3471_s17 + $0x58] ss:$0 sps:$4 sm:$0x33]  }
 0x145   : > { %2782 = vmatmul.mubr.msk.bf16.vlgmr.msra.gmra.mrb[92].mxu0 %vm383_vm3, %v1565_v31  ;;  %2751 = vmatprep.mubr.msk.bf16.mxu1 %vm3241_vm0, %v3240_v0 }
 0x146   : > { %2856 = vmatpush3.bf16.msra.mxu0 %v2038_v34  ;;  %2785 = vmatprep.mubr.msk.bf16.mxu0 %vm3241_vm0, %v3240_v0 }
 0x14c   : > { %2752 = vmatmul.mubr.msk.bf16.gmra.mrb[96].mxu1 %vm383_vm3, %v3650_v37  ;;  %v1571_v37 = vsel %vm1321_vm5, %v1568_v39, %v1570_v35 }
 0x14d   : > { %2786 = vmatmul.mubr.msk.bf16.gmra.mrb[96].mxu0 %vm383_vm3, %v1567_v19  ;;  %2755 = vmatprep.mubr.msk.bf16.mxu1 %vm3241_vm0, %v3240_v0 }
 0x14e   : > { %2789 = vmatprep.mubr.msk.bf16.mxu0 %vm3241_vm0, %v3240_v0 }
 0x154   : > { %2756 = vmatmul.mubr.msk.bf16.gmra.mrb[100].mxu1 %vm383_vm3, %v3666_v42  ;;  %v1333_v42 = vrot.slane %v3767_v41, 2 }
 0x155   : > { %2790 = vmatmul.mubr.msk.bf16.gmra.mrb[100].mxu0 %vm383_vm3, %v1569_v32  ;;  %2759 = vmatprep.mubr.msk.bf16.mxu1 %vm3241_vm0, %v3240_v0  ;;  %v1340_v32 = vsel %vm1321_vm5, %v1337_v8, %v1339_v20 }
 0x156   : > { %2793 = vmatprep.mubr.msk.bf16.mxu0 %vm3241_vm0, %v3240_v0  ;;  %v1334_v55 = vsel %vm1321_vm5, %v1331_v45, %v1333_v42  ;;  %v1336_v2 = vsel %vm1321_vm5, %v1333_v42, %v1335_v58  ;;  %v1756_v42 = vrot.slane %v1754_v28, 3  ;;  %v1763_v58 = vshll.u32 %v3851_v33, 16 }
 0x15c   : > { %2760 = vmatmul.mubr.msk.bf16.gmra.mrb[104].mxu1 %vm383_vm3, %v3684_v47 }
 0x15d   : > { %2794 = vmatmul.mubr.msk.bf16.gmra.mrb[104].mxu0 %vm383_vm3, %v1571_v37  ;;  %2763 = vmatprep.mubr.msk.bf16.mxu1 %vm3241_vm0, %v3240_v0  ;;  %v1748_v37 = vrot.slane %v1746_v27, 3 }
 0x15e   : > { %2797 = vmatprep.mubr.msk.bf16.mxu0 %vm3241_vm0, %v3240_v0 }
 0x15f   : > { %v3903_v11 = vpop.f32.mrb[0].mxu1 }
 0x160   : > { %v3896_v48 = vpop.f32.mrb[0].mxu0  ;;  %v2575_v23 = vpop.f32.mrb[1].mxu1 }
 0x161   : > { %v2555_v10 = vpop.f32.mrb[1].mxu0  ;;  %v3909_v47 = vpop.f32.mrb[2].mxu1 }
 0x162   : > { %v3901_v49 = vpop.f32.mrb[2].mxu0  ;;  %v2576_v41 = vpop.f32.mrb[3].mxu1 }
 0x163   : > { %v2556_v54 = vpop.f32.mrb[3].mxu0  ;;  %v1757_v41 = vor.u32 %v1756_v42, %v1753_v46 }
 0x164   : > { %2764 = vmatmul.mubr.msk.bf16.gmra.mrb[108].mxu1 %vm383_vm3, %v1334_v55  ;;  %v1984_v54 = vld [vmem:[%s3471_s17 + $0x10] sm:$0x8]  ;;  %v1749_v55 = vor.u32 %v1748_v37, %v1745_v25  ;;  %v1771_v37 = vrot.slane %v1769_v24, 2 }
 0x165   : > { %2798 = vmatmul.mubr.msk.bf16.gmra.mrb[108].mxu0 %vm383_vm3, %v1573_v50  ;;  %2767 = vmatprep.mubr.msk.bf16.mxu1 %vm3241_vm0, %v3240_v0  ;;  %v1580_v50 = vrot.slane %v3040_v29, 2 }
 0x166   : > { %2801 = vmatprep.mubr.msk.bf16.mxu0 %vm3241_vm0, %v3240_v0 }
 0x167   : > { %v3926_v45 = vpop.f32.mrb[4].mxu1 }
 0x168   : > { %v3919_v57 = vpop.f32.mrb[4].mxu0  ;;  %v2579_v38 = vpop.f32.mrb[5].mxu1 }
 0x169   : > { %v2559_v44 = vpop.f32.mrb[5].mxu0  ;;  %v3932_v1 = vpop.f32.mrb[6].mxu1  ;;  %v1581_v38 = vsel %vm1321_vm5, %v1578_v61, %v1580_v50  ;;  %v1994_v50 = vrot.slane %v3851_v33, 3 }
 0x16a   : > { %v3924_v59 = vpop.f32.mrb[6].mxu0  ;;  %v2580_v4 = vpop.f32.mrb[7].mxu1 }
 0x16b   : > { %v2560_v63 = vpop.f32.mrb[7].mxu0 }
 0x16c   : > { %2768 = vmatmul.mubr.msk.bf16.gmra.mrb[112].mxu1 %vm383_vm3, %v1336_v2  ;;  %v2447_v2 = vcombine.low %v1984_v54, %v3828_v21  ;;  %v1992_v21 = vrot.slane %v3837_v26, 3 }
 0x16d   : > { %2802 = vmatmul.mubr.msk.bf16.gmra.mrb[112].mxu0 %vm383_vm3, %v1575_v60  ;;  %2771 = vmatprep.mubr.msk.bf16.mxu1 %vm3241_vm0, %v3240_v0 }
 0x16e   : > { %2805 = vmatprep.mubr.msk.bf16.mxu0 %vm3241_vm0, %v3240_v0  ;;  %v1991_v61 = vrot.slane %v2447_v2, 3 }
 0x16f   : > { %v3947_v13 = vpop.f32.mrb[8].mxu1 }
 0x170   : > { %v3940_v56 = vpop.f32.mrb[8].mxu0  ;;  %v2583_v3 = vpop.f32.mrb[9].mxu1 }
 0x171   : > { %v2563_v9 = vpop.f32.mrb[9].mxu0  ;;  %v3953_v17 = vpop.f32.mrb[10].mxu1  ;;  %v1765_v3 = vrot.slane %v1763_v58, 3 }
 0x172   : > { %v3945_v12 = vpop.f32.mrb[10].mxu0  ;;  %v2584_v5 = vpop.f32.mrb[11].mxu1 }
 0x173   : > { %v2564_v16 = vpop.f32.mrb[11].mxu0 }
 0x174   : > { %2772 = vmatmul.mubr.msk.bf16.gmra.mrb[116].mxu1 %vm383_vm3, %v1338_v18  ;;  %v1762_v16 = vrot.slane %v1760_v51, 2 }
 0x175   : > { %2806 = vmatmul.mubr.msk.bf16.gmra.mrb[116].mxu0 %vm383_vm3, %v1577_v14  ;;  %2775 = vmatprep.mubr.msk.bf16.mxu1 %vm3241_vm0, %v3240_v0  ;;  %v1758_v14 = vsel %vm1741_vm7, %v1749_v55, %v1757_v41  ;;  %v1778_v55 = vshrl.u32 %v3876_v40, 16 }
 0x176   : > { %2809 = vmatprep.mubr.msk.bf16.mxu0 %vm3241_vm0, %v3240_v0  ;;  %v1766_v20 = vor.u32 %v1765_v3, %v1762_v16 }
 0x177   : > { %v3972_v34 = vpop.f32.mrb[12].mxu1 }
 0x178   : > { %v3962_v22 = vpop.f32.mrb[12].mxu0  ;;  %v2587_v39 = vpop.f32.mrb[13].mxu1  ;;  %v1767_v25 = vsel %vm1741_vm7, %v1757_v41, %v1766_v20  ;;  %v1781_v41 = vshll.u32 %v3876_v40, 16 }
 0x179   : > { %v2567_v30 = vpop.f32.mrb[13].mxu0  ;;  %v3977_v35 = vpop.f32.mrb[14].mxu1 }
 0x17a   : > { %v3970_v31 = vpop.f32.mrb[14].mxu0  ;;  %v2588_v10 = vpop.f32.mrb[15].mxu1 }
 0x17b   : > { %v2568_v19 = vpop.f32.mrb[15].mxu0 }
 0x17c   : > { %2776 = vmatmul.mubr.msk.bf16.gmra.mrb[120].mxu1 %vm383_vm3, %v1340_v32 }
 0x17d   : > { %2810 = vmatmul.mubr.msk.bf16.gmra.mrb[120].mxu0 %vm383_vm3, %v1579_v7  ;;  %2819 = vmatprep.mubr.msk.bf16.mxu1 %vm3241_vm0, %v3240_v0  ;;  %v1993_v7 = vsel %vm1990_vm8, %v1991_v61, %v1992_v21  ;;  %v1787_v61 = vshrl.u32 %v3888_v43, 16 }
 0x17e   : > { %2813 = vmatprep.mubr.msk.bf16.mxu0 %vm3241_vm0, %v3240_v0 }
 0x17f   : > { %v575_v60 = vpop.f32.mrb[16].mxu1 }
 0x180   : > { %v3984_v23 = vpop.f32.mrb[16].mxu0  ;;  %v576_v4 = vadd.f32 %v575_v60, %v3896_v48  ;;  %v2593_v53 = vpop.f32.mrb[17].mxu1  ;;  %v1995_v60 = vsel %vm1990_vm8, %v1992_v21, %v1994_v50  ;;  %v1790_v21 = vshll.u32 %v3888_v43, 16 }
 0x181   : > { %v2571_v44 = vpop.f32.mrb[17].mxu0  ;;  %v578_v9 = vpop.f32.mrb[18].mxu1 }
 0x182   : > { %v3990_v63 = vpop.f32.mrb[18].mxu0  ;;  %v579_v18 = vadd.f32 %v578_v9, %v3901_v49  ;;  %v2594_v5 = vpop.f32.mrb[19].mxu1  ;;  %v1772_v49 = vshll.u32 %v3864_v36, 16  ;;  %v1780_v9 = vrot.slane %v1778_v55, 2 }
 0x183   : > { %v2572_v8 = vpop.f32.mrb[19].mxu0 }
 0x184   : > { %2820 = vmatmul.mubr.msk.bf16.vlgmr.msra.gmra.mrb[124].mxu1 %vm383_vm3, %v1758_v14  ;;  %v1774_v46 = vrot.slane %v1772_v49, 3  ;;  %v1783_v14 = vrot.slane %v1781_v41, 3 }
 0x185   : > { %2814 = vmatmul.mubr.msk.bf16.gmra.mrb[124].mxu0 %vm383_vm3, %v1581_v38  ;;  %2823 = vmatprep.mubr.msk.bf16.mxu1 %vm3241_vm0, %v3240_v0 }
 0x186   : > { %2857 = vmatprep.mubr.msk.bf16.mxu0 %vm3241_vm0, %v3240_v0  ;;  %v1775_v54 = vor.u32 %v1774_v46, %v1771_v37  ;;  %v1784_v5 = vor.u32 %v1783_v14, %v1780_v9  ;;  %v1998_v37 = vrot.slane %v3876_v40, 3  ;;  %v1805_v14 = vshrl.u32 %v3930_v62, 16 }
 0x187   : > { %v583_v28 = vpop.f32.mrb[20].mxu1 }
 0x188   : > { %v736_v48 = vpop.f32.mrb[20].mxu0  ;;  %v584_v26 = vadd.f32 %v583_v28, %v3919_v57  ;;  %v2597_v29 = vpop.f32.mrb[21].mxu1  ;;  %v1776_v8 = vsel %vm1741_vm7, %v1766_v20, %v1775_v54 }
 0x189   : > { %v4006_v27 = vadd.f32 %v736_v48, %v576_v4  ;;  %v2631_v6 = vpop.f32.mrb[21].mxu0  ;;  %v586_v32 = vpop.f32.mrb[22].mxu1  ;;  %v1789_v29 = vrot.slane %v1787_v61, 2 }
 0x18a   : > { %v739_v30 = vpop.f32.mrb[22].mxu0  ;;  %v587_v42 = vadd.f32 %v586_v32, %v3924_v59  ;;  %v2598_v10 = vpop.f32.mrb[23].mxu1 }
 0x18b   : > { %v4010_v19 = vadd.f32 %v739_v30, %v579_v18  ;;  %v2632_v39 = vpop.f32.mrb[23].mxu0  ;;  %v1996_v18 = vrot.slane %v3864_v36, 3  ;;  %v1799_v10 = vshll.u32 %v3907_v52, 16 }
 0x18c   : > { %2824 = vmatmul.mubr.msk.bf16.gmra.mrb[128].mxu1 %vm383_vm3, %v1767_v25  ;;  %v1792_v39 = vrot.slane %v1790_v21, 3 }
 0x18d   : > { %2858 = vmatmul.mubr.msk.bf16.vlgmr.msra.gmra.mrb[128].mxu0 %vm383_vm3, %v1993_v7  ;;  %2827 = vmatprep.mubr.msk.bf16.mxu1 %vm3241_vm0, %v3240_v0  ;;  %v1997_v49 = vsel %vm1990_vm8, %v1994_v50, %v1996_v18  ;;  %v1999_v55 = vsel %vm1990_vm8, %v1996_v18, %v1998_v37 }
 0x18e   : > { %2861 = vmatprep.mubr.msk.bf16.mxu0 %vm3241_vm0, %v3240_v0  ;;  %v1793_v46 = vor.u32 %v1792_v39, %v1789_v29  ;;  %v1814_v29 = vshrl.u32 %v3951_v15, 16 }
 0x18f   : > { %v591_v58 = vpop.f32.mrb[24].mxu1 }
 0x190   : > { %v744_v57 = vpop.f32.mrb[24].mxu0  ;;  %v592_v33 = vadd.f32 %v591_v58, %v3940_v56  ;;  %v2601_v38 = vpop.f32.mrb[25].mxu1 }
 0x191   : > { %v4023_v59 = vadd.f32 %v744_v57, %v584_v26  ;;  %v2635_v51 = vpop.f32.mrb[25].mxu0  ;;  %v594_v53 = vpop.f32.mrb[26].mxu1  ;;  %v1785_v26 = vsel %vm1741_vm7, %v1775_v54, %v1784_v5  ;;  %v1801_v38 = vrot.slane %v1799_v10, 3 }
 0x192   : > { %v747_v44 = vpop.f32.mrb[26].mxu0  ;;  %v595_v16 = vadd.f32 %v594_v53, %v3945_v12  ;;  %v2602_v3 = vpop.f32.mrb[27].mxu1 }
 0x193   : > { %v4027_v2 = vadd.f32 %v747_v44, %v587_v42  ;;  %v2636_v4 = vpop.f32.mrb[27].mxu0  ;;  %v1796_v42 = vshrl.u32 %v3907_v52, 16 }
 0x194   : > { %2828 = vmatmul.mubr.msk.bf16.gmra.mrb[132].mxu1 %vm383_vm3, %v1776_v8  ;;  %v2000_v8 = vrot.slane %v3888_v43, 3 }
 0x195   : > { %2862 = vmatmul.mubr.msk.bf16.gmra.mrb[132].mxu0 %vm383_vm3, %v1995_v60  ;;  %2831 = vmatprep.mubr.msk.bf16.mxu1 %vm3241_vm0, %v3240_v0  ;;  %v1794_v60 = vsel %vm1741_vm7, %v1784_v5, %v1793_v46 }
 0x196   : > { %2865 = vmatprep.mubr.msk.bf16.mxu0 %vm3241_vm0, %v3240_v0  ;;  %v2001_v5 = vsel %vm1990_vm8, %v1998_v37, %v2000_v8 }
 0x197   : > { %v599_v20 = vpop.f32.mrb[28].mxu1 }
 0x198   : > { %v752_v56 = vpop.f32.mrb[28].mxu0  ;;  %v600_v36 = vadd.f32 %v599_v20, %v3962_v22  ;;  %v2605_v6 = vpop.f32.mrb[29].mxu1 }
 0x199   : > { %v4040_v12 = vadd.f32 %v752_v56, %v592_v33  ;;  %v2639_v48 = vpop.f32.mrb[29].mxu0  ;;  %v602_v7 = vpop.f32.mrb[30].mxu1  ;;  %v1798_v33 = vrot.slane %v1796_v42, 2 }
 0x19a   : > { %v755_v24 = vpop.f32.mrb[30].mxu0  ;;  %v603_v32 = vadd.f32 %v602_v7, %v3970_v31  ;;  %v2606_v25 = vpop.f32.mrb[31].mxu1  ;;  %v2002_v7 = vrot.slane %v3907_v52, 3 }
 0x19b   : > { %v4044_v28 = vadd.f32 %v755_v24, %v595_v16  ;;  %v2640_v30 = vpop.f32.mrb[31].mxu0  ;;  %v1802_v9 = vor.u32 %v1801_v38, %v1798_v33  ;;  %v1808_v16 = vshll.u32 %v3930_v62, 16 }
 0x19c   : > { %2832 = vmatmul.mubr.msk.bf16.gmra.mrb[136].mxu1 %vm383_vm3, %v1785_v26 }
 0x19d   : > { %2866 = vmatmul.mubr.msk.bf16.gmra.mrb[136].mxu0 %vm383_vm3, %v1997_v49  ;;  %2835 = vmatprep.mubr.msk.bf16.mxu1 %vm3241_vm0, %v3240_v0  ;;  %v1803_v24 = vsel %vm1741_vm7, %v1793_v46, %v1802_v9  ;;  %v1807_v49 = vrot.slane %v1805_v14, 2 }
 0x19e   : > { %2869 = vmatprep.mubr.msk.bf16.mxu0 %vm3241_vm0, %v3240_v0 }
 0x19f   : > { %v607_v57 = vpop.f32.mrb[32].mxu1 }
 0x1a0   : > { %v760_v22 = vpop.f32.mrb[32].mxu0  ;;  %v608_v40 = vadd.f32 %v607_v57, %v3984_v23  ;;  %v2609_v41 = vpop.f32.mrb[33].mxu1 }
 0x1a1   : > { %v4057_v31 = vadd.f32 %v760_v22, %v600_v36  ;;  %v2643_v50 = vpop.f32.mrb[33].mxu0  ;;  %v610_v44 = vpop.f32.mrb[34].mxu1  ;;  %v1810_v36 = vrot.slane %v1808_v16, 3  ;;  %v2003_v22 = vsel %vm1990_vm8, %v2000_v8, %v2002_v7 }
 0x1a2   : > { %v763_v54 = vpop.f32.mrb[34].mxu0  ;;  %v611_v4 = vadd.f32 %v610_v44, %v3990_v63  ;;  %v2610_v53 = vpop.f32.mrb[35].mxu1 }
 0x1a3   : > { %v4061_v51 = vadd.f32 %v763_v54, %v603_v32  ;;  %v2644_v58 = vpop.f32.mrb[35].mxu0  ;;  %v1811_v26 = vor.u32 %v1810_v36, %v1807_v49  ;;  %v1816_v54 = vrot.slane %v1814_v29, 2 }
 0x1a4   : > { %2836 = vmatmul.mubr.msk.bf16.gmra.mrb[140].mxu1 %vm383_vm3, %v1794_v60 }
 0x1a5   : > { %2870 = vmatmul.mubr.msk.bf16.gmra.mrb[140].mxu0 %vm383_vm3, %v1999_v55  ;;  %2839 = vmatprep.mubr.msk.bf16.mxu1 %vm3241_vm0, %v3240_v0  ;;  %v1812_v57 = vsel %vm1741_vm7, %v1802_v9, %v1811_v26 }
 0x1a6   : > { %2873 = vmatprep.mubr.msk.bf16.mxu0 %vm3241_vm0, %v3240_v0 }
 0x1a7   : > { %v615_v18 = vpop.f32.mrb[36].mxu1 }
 0x1a8   : > { %v768_v23 = vpop.f32.mrb[36].mxu0  ;;  %v616_v43 = vadd.f32 %v615_v18, %v3903_v11  ;;  %v2613_v61 = vpop.f32.mrb[37].mxu1 }
 0x1a9   : > { %v4074_v63 = vadd.f32 %v768_v23, %v608_v40  ;;  %v2647_v3 = vpop.f32.mrb[37].mxu0  ;;  %v618_v20 = vpop.f32.mrb[38].mxu1  ;;  %v3042_v40 = vld [vmem:[%s3471_s17 + $0x58] ss:$0 sps:$4 sm:$0x77]  }
 0x1aa   : > { %v771_v56 = vpop.f32.mrb[38].mxu0  ;;  %v619_v6 = vadd.f32 %v618_v20, %v3909_v47  ;;  %v2614_v30 = vpop.f32.mrb[39].mxu1  ;;  %v1817_v47 = vshll.u32 %v3951_v15, 16  ;;  %v1823_v33 = vshrl.u32 %v3042_v40, 16  ;;  %v1826_v38 = vshll.u32 %v3042_v40, 16 }
 0x1ab   : > { %v4078_v21 = vadd.f32 %v771_v56, %v611_v4  ;;  %v2648_v48 = vpop.f32.mrb[39].mxu0 }
 0x1ac   : > { %2840 = vmatmul.mubr.msk.bf16.gmra.mrb[144].mxu1 %vm383_vm3, %v1803_v24  ;;  %v1819_v55 = vrot.slane %v1817_v47, 3  ;;  %v1825_v56 = vrot.slane %v1823_v33, 2  ;;  %v2006_v48 = vrot.slane %v3951_v15, 3 }
 0x1ad   : > { %2874 = vmatmul.mubr.msk.bf16.gmra.mrb[144].mxu0 %vm383_vm3, %v2001_v5  ;;  %2843 = vmatprep.mubr.msk.bf16.mxu1 %vm3241_vm0, %v3240_v0  ;;  %v1828_v5 = vrot.slane %v1826_v38, 3 }
 0x1ae   : > { %2877 = vmatprep.mubr.msk.bf16.mxu0 %vm3241_vm0, %v3240_v0  ;;  %v1820_v60 = vor.u32 %v1819_v55, %v1816_v54 }
 0x1af   : > { %v623_v25 = vpop.f32.mrb[40].mxu1  ;;  %v1829_v20 = vor.u32 %v1828_v5, %v1825_v56 }
 0x1b0   : > { %v776_v11 = vpop.f32.mrb[40].mxu0  ;;  %v624_v52 = vadd.f32 %v623_v25, %v3926_v45  ;;  %v2617_v46 = vpop.f32.mrb[41].mxu1  ;;  %v2004_v45 = vrot.slane %v3930_v62, 3  ;;  %v1821_v18 = vsel %vm1741_vm7, %v1811_v26, %v1820_v60  ;;  %v2008_v25 = vrot.slane %v3042_v40, 3 }
 0x1b1   : > { %v4091_v39 = vadd.f32 %v776_v11, %v616_v43  ;;  %v2651_v32 = vpop.f32.mrb[41].mxu0  ;;  %v626_v50 = vpop.f32.mrb[42].mxu1  ;;  %v1830_v29 = vsel %vm1741_vm7, %v1820_v60, %v1829_v20 }
 0x1b2   : > { %v779_v37 = vpop.f32.mrb[42].mxu0  ;;  %v627_v41 = vadd.f32 %v626_v50, %v3932_v1  ;;  %v2618_v58 = vpop.f32.mrb[43].mxu1  ;;  %v2005_v23 = vsel %vm1990_vm8, %v2002_v7, %v2004_v45 }
 0x1b3   : > { %v4095_v42 = vadd.f32 %v779_v37, %v619_v6  ;;  %v2652_v10 = vpop.f32.mrb[43].mxu0  ;;  %v2007_v6 = vsel %vm1990_vm8, %v2004_v45, %v2006_v48 }
 0x1b4   : > { %2844 = vmatmul.mubr.msk.bf16.gmra.mrb[148].mxu1 %vm383_vm3, %v1812_v57  ;;  %v2009_v10 = vsel %vm1990_vm8, %v2006_v48, %v2008_v25 }
 0x1b5   : > { %2878 = vmatmul.mubr.msk.bf16.gmra.mrb[148].mxu0 %vm383_vm3, %v2003_v22  ;;  %2847 = vmatprep.mubr.msk.bf16.mxu1 %vm3241_vm0, %v3240_v0 }
 0x1b6   : > { %2881 = vmatprep.mubr.msk.bf16.mxu0 %vm3241_vm0, %v3240_v0 }
 0x1b7   : > { %v631_v53 = vpop.f32.mrb[44].mxu1 }
 0x1b8   : > { %v784_v44 = vpop.f32.mrb[44].mxu0  ;;  %v632_v9 = vadd.f32 %v631_v53, %v3947_v13  ;;  %v2621_v14 = vpop.f32.mrb[45].mxu1 }
 0x1b9   : > { %v4107_v4 = vadd.f32 %v784_v44, %v624_v52  ;;  %v2655_v1 = vpop.f32.mrb[45].mxu0  ;;  %v634_v3 = vpop.f32.mrb[46].mxu1 }
 0x1ba   : > { %v787_v8 = vpop.f32.mrb[46].mxu0  ;;  %v635_v43 = vadd.f32 %v634_v3, %v3953_v17  ;;  %v2622_v61 = vpop.f32.mrb[47].mxu1 }
 0x1bb   : > { %v4111_v62 = vadd.f32 %v787_v8, %v627_v41  ;;  %v2656_v16 = vpop.f32.mrb[47].mxu0 }
 0x1bc   : > { %2848 = vmatmul.mubr.msk.bf16.gmra.mrb[152].mxu1 %vm383_vm3, %v1821_v18 }
 0x1bd   : > { %2882 = vmatmul.mubr.msk.bf16.gmra.mrb[152].mxu0 %vm383_vm3, %v2005_v23  ;;  %2851 = vmatprep.mubr.msk.bf16.mxu1 %vm3241_vm0, %v3240_v0 }
 0x1be   : > { %2885 = vmatprep.mubr.msk.bf16.mxu0 %vm3241_vm0, %v3240_v0 }
 0x1bf   : > { %v639_v36 = vpop.f32.mrb[48].mxu1 }
 0x1c0   : > { %v792_v13 = vpop.f32.mrb[48].mxu0  ;;  %v640_v30 = vadd.f32 %v639_v36, %v3972_v34  ;;  %v2625_v7 = vpop.f32.mrb[49].mxu1 }
 0x1c1   : > { %v4122_v24 = vadd.f32 %v792_v13, %v632_v9  ;;  %v2659_v49 = vpop.f32.mrb[49].mxu0  ;;  %v642_v26 = vpop.f32.mrb[50].mxu1 }
 0x1c2   : > { %v795_v17 = vpop.f32.mrb[50].mxu0  ;;  %v643_v47 = vadd.f32 %v642_v26, %v3977_v35  ;;  %v2626_v32 = vpop.f32.mrb[51].mxu1 }
 0x1c3   : > { %v4126_v11 = vadd.f32 %v795_v17, %v635_v43  ;;  %v2660_v15 = vpop.f32.mrb[51].mxu0 }
 0x1c4   : > { %2852 = vmatmul.mubr.msk.bf16.gmra.mrb[156].mxu1 %vm383_vm3, %v1830_v29 }
 0x1c5   : > { %2886 = vmatmul.mubr.msk.bf16.gmra.mrb[156].mxu0 %vm383_vm3, %v2007_v6 }
 0x1c6   : > { %2889 = vmatprep.mubr.msk.bf16.mxu0 %vm3241_vm0, %v3240_v0 }
 0x1c7   : > { %v977_v52 = vpop.f32.mrb[52].mxu1 }
 0x1c8   : > { %v800_v37 = vpop.f32.mrb[52].mxu0  ;;  %v1048_v50 = vadd.f32 %v977_v52, %v4006_v27  ;;  %v2669_v35 = vpop.f32.mrb[53].mxu1 }
 0x1c9   : > { %v4134_v34 = vadd.f32 %v800_v37, %v640_v30  ;;  %v2663_v22 = vpop.f32.mrb[53].mxu0  ;;  %v980_v55 = vpop.f32.mrb[54].mxu1 }
 0x1ca   : > { %v803_v46 = vpop.f32.mrb[54].mxu0  ;;  %v1049_v0 = vadd.f32 %v980_v55, %v4010_v19  ;;  %v2670_v40 = vpop.f32.mrb[55].mxu1 }
 0x1cb   : > { %v4138_v57 = vadd.f32 %v803_v46, %v643_v47  ;;  %v2664_v54 = vpop.f32.mrb[55].mxu0 }
 0x1cd   : > { %2890 = vmatmul.mubr.msk.bf16.gmra.mrb[160].mxu0 %vm383_vm3, %v2009_v10 }
 0x1cf   : > { %v985_v44 = vpop.f32.mrb[56].mxu1 }
 0x1d0   : > { %v1226_v41 = vpop.f32.mrb[56].mxu0  ;;  %v1050_v33 = vadd.f32 %v985_v44, %v4023_v59  ;;  %v2673_v38 = vpop.f32.mrb[57].mxu1 }
 0x1d1   : > { %v4142_v58 = vadd.f32 %v1226_v41, %v1048_v50  ;;  %v2707_v45 = vpop.f32.mrb[57].mxu0  ;;  %v988_v53 = vpop.f32.mrb[58].mxu1 }
 0x1d2   : > { %v1229_v60 = vpop.f32.mrb[58].mxu0  ;;  %v1051_v8 = vadd.f32 %v988_v53, %v4027_v2  ;;  %v2674_v23 = vpop.f32.mrb[59].mxu1 }
 0x1d3   : > { %v4145_v27 = vadd.f32 %v1229_v60, %v1049_v0  ;;  %v2708_v1 = vpop.f32.mrb[59].mxu0 }
 0x1d7   : > { %v993_v16 = vpop.f32.mrb[60].mxu1 }
 0x1d8   : > { %v1234_v19 = vpop.f32.mrb[60].mxu0  ;;  %v1052_v18 = vadd.f32 %v993_v16, %v4040_v12  ;;  %v2677_v56 = vpop.f32.mrb[61].mxu1 }
 0x1d9   : > { %v4148_v9 = vadd.f32 %v1234_v19, %v1050_v33  ;;  %v2711_v14 = vpop.f32.mrb[61].mxu0  ;;  %v996_v43 = vpop.f32.mrb[62].mxu1 }
 0x1da   : > { %v1237_v3 = vpop.f32.mrb[62].mxu0  ;;  %v1053_v61 = vadd.f32 %v996_v43, %v4044_v28  ;;  %v2678_v48 = vpop.f32.mrb[63].mxu1 }
 0x1db   : > { %v4151_v5 = vadd.f32 %v1237_v3, %v1051_v8  ;;  %v2712_v59 = vpop.f32.mrb[63].mxu0 }
 0x1df   : > { %v1001_v49 = vpop.f32.mrb[64].mxu1 }
 0x1e0   : > { %v1242_v13 = vpop.f32.mrb[64].mxu0  ;;  %v1054_v17 = vadd.f32 %v1001_v49, %v4057_v31  ;;  %v2681_v6 = vpop.f32.mrb[65].mxu1 }
 0x1e1   : > { %v4154_v20 = vadd.f32 %v1242_v13, %v1052_v18  ;;  %v2715_v2 = vpop.f32.mrb[65].mxu0  ;;  %v1004_v7 = vpop.f32.mrb[66].mxu1 }
 0x1e2   : > { %v1245_v36 = vpop.f32.mrb[66].mxu0  ;;  %v1055_v15 = vadd.f32 %v1004_v7, %v4061_v51  ;;  %v2682_v26 = vpop.f32.mrb[67].mxu1 }
 0x1e3   : > { %v4157_v30 = vadd.f32 %v1245_v36, %v1053_v61  ;;  %v2716_v12 = vpop.f32.mrb[67].mxu0 }
 0x1e7   : > { %v1009_v32 = vpop.f32.mrb[68].mxu1 }
 0x1e8   : > { %v1250_v29 = vpop.f32.mrb[68].mxu0  ;;  %v1056_v37 = vadd.f32 %v1009_v32, %v4074_v63  ;;  %v2685_v22 = vpop.f32.mrb[69].mxu1 }
 0x1e9   : > { %v4160_v47 = vadd.f32 %v1250_v29, %v1054_v17  ;;  %v2719_v28 = vpop.f32.mrb[69].mxu0  ;;  %v1012_v46 = vpop.f32.mrb[70].mxu1 }
 0x1ea   : > { %v1253_v25 = vpop.f32.mrb[70].mxu0  ;;  %v1057_v10 = vadd.f32 %v1012_v46, %v4078_v21  ;;  %v2686_v50 = vpop.f32.mrb[71].mxu1 }
 0x1eb   : > { %v4163_v52 = vadd.f32 %v1253_v25, %v1055_v15  ;;  %v2720_v31 = vpop.f32.mrb[71].mxu0 }
 0x1ef   : > { %v1017_v55 = vpop.f32.mrb[72].mxu1 }
 0x1f0   : > { %v1258_v35 = vpop.f32.mrb[72].mxu0  ;;  %v1058_v40 = vadd.f32 %v1017_v55, %v4091_v39  ;;  %v2689_v41 = vpop.f32.mrb[73].mxu1 }
 0x1f1   : > { %v4166_v54 = vadd.f32 %v1258_v35, %v1056_v37  ;;  %v2723_v51 = vpop.f32.mrb[73].mxu0  ;;  %v1020_v44 = vpop.f32.mrb[74].mxu1 }
 0x1f2   : > { %v1261_v0 = vpop.f32.mrb[74].mxu0  ;;  %v1059_v60 = vadd.f32 %v1020_v44, %v4095_v42  ;;  %v2690_v33 = vpop.f32.mrb[75].mxu1 }
 0x1f3   : > { %v4169_v45 = vadd.f32 %v1261_v0, %v1057_v10  ;;  %v2724_v63 = vpop.f32.mrb[75].mxu0 }
 0x1f7   : > { %v1025_v53 = vpop.f32.mrb[76].mxu1 }
 0x1f8   : > { %v1266_v38 = vpop.f32.mrb[76].mxu0  ;;  %v1060_v23 = vadd.f32 %v1025_v53, %v4107_v4  ;;  %v2693_v19 = vpop.f32.mrb[77].mxu1 }
 0x1f9   : > { %v4172_v1 = vadd.f32 %v1266_v38, %v1058_v40  ;;  %v2727_v21 = vpop.f32.mrb[77].mxu0  ;;  %v1028_v16 = vpop.f32.mrb[78].mxu1 }
 0x1fa   : > { %v1269_v8 = vpop.f32.mrb[78].mxu0  ;;  %v1061_v3 = vadd.f32 %v1028_v16, %v4111_v62  ;;  %v2694_v18 = vpop.f32.mrb[79].mxu1 }
 0x1fb   : > { %v4175_v14 = vadd.f32 %v1269_v8, %v1059_v60  ;;  %v2728_v39 = vpop.f32.mrb[79].mxu0 }
 0x1ff   : > { %v1033_v43 = vpop.f32.mrb[80].mxu1 }
 0x200   : > { %v1274_v56 = vpop.f32.mrb[80].mxu0  ;;  %v1062_v48 = vadd.f32 %v1033_v43, %v4122_v24  ;;  %v2697_v13 = vpop.f32.mrb[81].mxu1 }
 0x201   : > { %v4178_v59 = vadd.f32 %v1274_v56, %v1060_v23  ;;  %v2731_v42 = vpop.f32.mrb[81].mxu0  ;;  %v1036_v49 = vpop.f32.mrb[82].mxu1 }
 0x202   : > { %v1277_v61 = vpop.f32.mrb[82].mxu0  ;;  %v1063_v36 = vadd.f32 %v1036_v49, %v4126_v11  ;;  %v2698_v17 = vpop.f32.mrb[83].mxu1 }
 0x203   : > { %v4181_v2 = vadd.f32 %v1277_v61, %v1061_v3  ;;  %v2732_v4 = vpop.f32.mrb[83].mxu0 }
 0x207   : > { %v1041_v7 = vpop.f32.mrb[84].mxu1 }
 0x208   : > { %v1282_v6 = vpop.f32.mrb[84].mxu0  ;;  %v1064_v26 = vadd.f32 %v1041_v7, %v4134_v34  ;;  %v2701_v29 = vpop.f32.mrb[85].mxu1 }
 0x209   : > { %v4184_v12 = vadd.f32 %v1282_v6, %v1062_v48  ;;  %v2735_v62 = vpop.f32.mrb[85].mxu0  ;;  %v1044_v32 = vpop.f32.mrb[86].mxu1 }
 0x20a   : > { %v1285_v15 = vpop.f32.mrb[86].mxu0  ;;  %v1065_v25 = vadd.f32 %v1044_v32, %v4138_v57  ;;  %v2702_v37 = vpop.f32.mrb[87].mxu1 }
 0x20b   : > { %v4187_v28 = vadd.f32 %v1285_v15, %v1063_v36  ;;  %v2736_v24 = vpop.f32.mrb[87].mxu0 }
 0x20f   : > { %v1405_v46 = vpop.f32.mrb[88].mxu1 }
 0x210   : > { %v1290_v22 = vpop.f32.mrb[88].mxu0  ;;  %v1476_v50 = vadd.f32 %v1405_v46, %v4142_v58  ;;  %v2745_v35 = vpop.f32.mrb[89].mxu1 }
 0x211   : > { %v4190_v31 = vadd.f32 %v1290_v22, %v1064_v26  ;;  %v2739_v11 = vpop.f32.mrb[89].mxu0  ;;  %v1408_v55 = vpop.f32.mrb[90].mxu1 }
 0x212   : > { %v1293_v10 = vpop.f32.mrb[90].mxu0  ;;  %v1477_v0 = vadd.f32 %v1408_v55, %v4145_v27  ;;  %v2746_v40 = vpop.f32.mrb[91].mxu1 }
 0x213   : > { %v4193_v51 = vadd.f32 %v1293_v10, %v1065_v25  ;;  %v2740_v34 = vpop.f32.mrb[91].mxu0 }
 0x217   : > { %v1413_v44 = vpop.f32.mrb[92].mxu1 }
 0x218   : > { %v1646_v41 = vpop.f32.mrb[92].mxu0  ;;  %v1478_v33 = vadd.f32 %v1413_v44, %v4148_v9  ;;  %v2749_v38 = vpop.f32.mrb[93].mxu1 }
 0x219   : > { %v4196_v63 = vadd.f32 %v1646_v41, %v1476_v50  ;;  %v2783_v57 = vpop.f32.mrb[93].mxu0  ;;  %v1416_v53 = vpop.f32.mrb[94].mxu1 }
 0x21a   : > { %v1649_v60 = vpop.f32.mrb[94].mxu0  ;;  %v1479_v8 = vadd.f32 %v1416_v53, %v4151_v5  ;;  %v2750_v23 = vpop.f32.mrb[95].mxu1 }
 0x21b   : > { %v4199_v21 = vadd.f32 %v1649_v60, %v1477_v0  ;;  %v2784_v58 = vpop.f32.mrb[95].mxu0 }
 0x21f   : > { %v1421_v16 = vpop.f32.mrb[96].mxu1 }
 0x220   : > { %v1654_v19 = vpop.f32.mrb[96].mxu0  ;;  %v1480_v18 = vadd.f32 %v1421_v16, %v4154_v20  ;;  %v2753_v56 = vpop.f32.mrb[97].mxu1 }
 0x221   : > { %v4202_v39 = vadd.f32 %v1654_v19, %v1478_v33  ;;  %v2787_v27 = vpop.f32.mrb[97].mxu0  ;;  %v1424_v43 = vpop.f32.mrb[98].mxu1 }
 0x222   : > { %v1657_v3 = vpop.f32.mrb[98].mxu0  ;;  %v1481_v61 = vadd.f32 %v1424_v43, %v4157_v30  ;;  %v2754_v48 = vpop.f32.mrb[99].mxu1 }
 0x223   : > { %v4205_v42 = vadd.f32 %v1657_v3, %v1479_v8  ;;  %v2788_v9 = vpop.f32.mrb[99].mxu0 }
 0x227   : > { %v1429_v49 = vpop.f32.mrb[100].mxu1 }
 0x228   : > { %v1662_v13 = vpop.f32.mrb[100].mxu0  ;;  %v1482_v17 = vadd.f32 %v1429_v49, %v4160_v47  ;;  %v2757_v6 = vpop.f32.mrb[101].mxu1 }
 0x229   : > { %v4208_v4 = vadd.f32 %v1662_v13, %v1480_v18  ;;  %v2791_v5 = vpop.f32.mrb[101].mxu0  ;;  %v1432_v7 = vpop.f32.mrb[102].mxu1 }
 0x22a   : > { %v1665_v36 = vpop.f32.mrb[102].mxu0  ;;  %v1483_v15 = vadd.f32 %v1432_v7, %v4163_v52  ;;  %v2758_v26 = vpop.f32.mrb[103].mxu1 }
 0x22b   : > { %v4211_v62 = vadd.f32 %v1665_v36, %v1481_v61  ;;  %v2792_v20 = vpop.f32.mrb[103].mxu0 }
 0x22f   : > { %v1437_v32 = vpop.f32.mrb[104].mxu1 }
 0x230   : > { %v1670_v29 = vpop.f32.mrb[104].mxu0  ;;  %v1484_v37 = vadd.f32 %v1437_v32, %v4166_v54  ;;  %v2761_v22 = vpop.f32.mrb[105].mxu1 }
 0x231   : > { %v4214_v24 = vadd.f32 %v1670_v29, %v1482_v17  ;;  %v2795_v30 = vpop.f32.mrb[105].mxu0  ;;  %v1440_v46 = vpop.f32.mrb[106].mxu1 }
 0x232   : > { %v1673_v25 = vpop.f32.mrb[106].mxu0  ;;  %v1485_v10 = vadd.f32 %v1440_v46, %v4169_v45  ;;  %v2762_v50 = vpop.f32.mrb[107].mxu1 }
 0x233   : > { %v4217_v11 = vadd.f32 %v1673_v25, %v1483_v15  ;;  %v2796_v47 = vpop.f32.mrb[107].mxu0 }
 0x237   : > { %v1445_v55 = vpop.f32.mrb[108].mxu1 }
 0x238   : > { %v1678_v35 = vpop.f32.mrb[108].mxu0  ;;  %v1486_v40 = vadd.f32 %v1445_v55, %v4172_v1  ;;  %v2765_v41 = vpop.f32.mrb[109].mxu1 }
 0x239   : > { %v4220_v34 = vadd.f32 %v1678_v35, %v1484_v37  ;;  %v2799_v52 = vpop.f32.mrb[109].mxu0  ;;  %v1448_v44 = vpop.f32.mrb[110].mxu1 }
 0x23a   : > { %v1681_v0 = vpop.f32.mrb[110].mxu0  ;;  %v1487_v60 = vadd.f32 %v1448_v44, %v4175_v14  ;;  %v2766_v33 = vpop.f32.mrb[111].mxu1 }
 0x23b   : > { %v4223_v57 = vadd.f32 %v1681_v0, %v1485_v10  ;;  %v2800_v54 = vpop.f32.mrb[111].mxu0 }
 0x23f   : > { %v1453_v53 = vpop.f32.mrb[112].mxu1 }
 0x240   : > { %v1686_v38 = vpop.f32.mrb[112].mxu0  ;;  %v1488_v23 = vadd.f32 %v1453_v53, %v4178_v59  ;;  %v2769_v19 = vpop.f32.mrb[113].mxu1 }
 0x241   : > { %v4226_v58 = vadd.f32 %v1686_v38, %v1486_v40  ;;  %v2803_v45 = vpop.f32.mrb[113].mxu0  ;;  %v1456_v16 = vpop.f32.mrb[114].mxu1 }
 0x242   : > { %v1689_v8 = vpop.f32.mrb[114].mxu0  ;;  %v1489_v3 = vadd.f32 %v1456_v16, %v4181_v2  ;;  %v2770_v18 = vpop.f32.mrb[115].mxu1 }
 0x243   : > { %v4229_v27 = vadd.f32 %v1689_v8, %v1487_v60  ;;  %v2804_v1 = vpop.f32.mrb[115].mxu0 }
 0x247   : > { %v1461_v43 = vpop.f32.mrb[116].mxu1 }
 0x248   : > { %v1694_v56 = vpop.f32.mrb[116].mxu0  ;;  %v1490_v48 = vadd.f32 %v1461_v43, %v4184_v12  ;;  %v2773_v13 = vpop.f32.mrb[117].mxu1 }
 0x249   : > { %v4232_v9 = vadd.f32 %v1694_v56, %v1488_v23  ;;  %v2807_v14 = vpop.f32.mrb[117].mxu0  ;;  %v1464_v49 = vpop.f32.mrb[118].mxu1 }
 0x24a   : > { %v1697_v61 = vpop.f32.mrb[118].mxu0  ;;  %v1491_v36 = vadd.f32 %v1464_v49, %v4187_v28  ;;  %v2774_v17 = vpop.f32.mrb[119].mxu1 }
 0x24b   : > { %v4235_v5 = vadd.f32 %v1697_v61, %v1489_v3  ;;  %v2808_v59 = vpop.f32.mrb[119].mxu0 }
 0x24f   : > { %v1469_v7 = vpop.f32.mrb[120].mxu1 }
 0x250   : > { %v1702_v6 = vpop.f32.mrb[120].mxu0  ;;  %v1492_v26 = vadd.f32 %v1469_v7, %v4190_v31  ;;  %v2777_v29 = vpop.f32.mrb[121].mxu1 }
 0x251   : > { %v4238_v20 = vadd.f32 %v1702_v6, %v1490_v48  ;;  %v2811_v2 = vpop.f32.mrb[121].mxu0  ;;  %v1472_v32 = vpop.f32.mrb[122].mxu1 }
 0x252   : > { %v1705_v15 = vpop.f32.mrb[122].mxu0  ;;  %v1493_v25 = vadd.f32 %v1472_v32, %v4193_v51  ;;  %v2778_v37 = vpop.f32.mrb[123].mxu1  ;;  %v4251_v51 = vld [vmem:[#allocation7] ss:$0 sm:$0xff] }
 0x253   : > { %v4241_v30 = vadd.f32 %v1705_v15, %v1491_v36  ;;  %v2812_v12 = vpop.f32.mrb[123].mxu0 }
 0x257   : > { %v1895_v46 = vpop.f32.mrb[124].mxu1 }
 0x258   : > { %v1710_v22 = vpop.f32.mrb[124].mxu0  ;;  %v1966_v50 = vadd.f32 %v1895_v46, %v4196_v63  ;;  %v2821_v35 = vpop.f32.mrb[125].mxu1 }
 0x259   : > { %v4244_v28 = vadd.f32 %v1710_v22, %v1492_v26  ;;  %v2815_v47 = vpop.f32.mrb[125].mxu0  ;;  %v1898_v55 = vpop.f32.mrb[126].mxu1 }
 0x25a   : > { %v1713_v10 = vpop.f32.mrb[126].mxu0  ;;  %v1967_v0 = vadd.f32 %v1898_v55, %v4199_v21  ;;  %v2822_v40 = vpop.f32.mrb[127].mxu1 }
 0x25b   : > { %v4247_v52 = vadd.f32 %v1713_v10, %v1493_v25  ;;  %v2816_v31 = vpop.f32.mrb[127].mxu0 }
 0x25f   : > { %v1903_v60 = vpop.f32.mrb[128].mxu1 }
 0x260   : > { %v2074_v41 = vpop.f32.mrb[128].mxu0  ;;  %v1968_v38 = vadd.f32 %v1903_v60, %v4202_v39  ;;  %v2825_v45 = vpop.f32.mrb[129].mxu1 }
 0x261   : > { %v2145_v54 = vadd.f32 %v2074_v41, %v1966_v50  ;;  %v2859_v44 = vpop.f32.mrb[129].mxu0  ;;  %v1906_v23 = vpop.f32.mrb[130].mxu1 }
 0x262   : > { %v2077_v33 = vpop.f32.mrb[130].mxu0  ;;  %v1969_v21 = vadd.f32 %v1906_v23, %v4205_v42  ;;  %v2826_v1 = vpop.f32.mrb[131].mxu1 }
 0x263   : > { %v2170_v63 = vadd.f32 %v4251_v51, %v2145_v54  ;;  %v2146_v53 = vadd.f32 %v2077_v33, %v1967_v0  ;;  %v2860_v8 = vpop.f32.mrb[131].mxu0 }
 0x265   : > { %2188 = vst [vmem:[%s4255_s24] sm:$0xff] %v2170_v63  ;;  %v2171_v19 = vadd.f32 %v4251_v51, %v2146_v53 }
 0x267   : > { %2189 = vst [vmem:[%s4255_s24 + $0x8] sm:$0xff] %v2171_v19  ;;  %v1911_v18 = vpop.f32.mrb[132].mxu1 }
 0x268   : > { %v2082_v39 = vpop.f32.mrb[132].mxu0  ;;  %v1970_v14 = vadd.f32 %v1911_v18, %v4208_v4  ;;  %v2829_v61 = vpop.f32.mrb[133].mxu1 }
 0x269   : > { %v2147_v16 = vadd.f32 %v2082_v39, %v1968_v38  ;;  %v2863_v3 = vpop.f32.mrb[133].mxu0  ;;  %v1914_v59 = vpop.f32.mrb[134].mxu1 }
 0x26a   : > { %v2085_v56 = vpop.f32.mrb[134].mxu0  ;;  %v1971_v42 = vadd.f32 %v1914_v59, %v4211_v62  ;;  %v2830_v36 = vpop.f32.mrb[135].mxu1 }
 0x26b   : > { %v2172_v43 = vadd.f32 %v4251_v51, %v2147_v16  ;;  %v2148_v48 = vadd.f32 %v2085_v56, %v1969_v21  ;;  %v2864_v13 = vpop.f32.mrb[135].mxu0 }
 0x26d   : > { %2190 = vst [vmem:[%s4255_s24 + $0x10] sm:$0xff] %v2172_v43  ;;  %v2173_v49 = vadd.f32 %v4251_v51, %v2148_v48 }
 0x26f   : > { %2191 = vst [vmem:[%s4255_s24 + $0x18] sm:$0xff] %v2173_v49  ;;  %v1919_v7 = vpop.f32.mrb[136].mxu1 }
 0x270   : > { %v2090_v17 = vpop.f32.mrb[136].mxu0  ;;  %v1972_v15 = vadd.f32 %v1919_v7, %v4214_v24  ;;  %v2833_v29 = vpop.f32.mrb[137].mxu1 }
 0x271   : > { %v2149_v6 = vadd.f32 %v2090_v17, %v1970_v14  ;;  %v2867_v2 = vpop.f32.mrb[137].mxu0  ;;  %v1922_v25 = vpop.f32.mrb[138].mxu1 }
 0x272   : > { %v2093_v4 = vpop.f32.mrb[138].mxu0  ;;  %v1973_v62 = vadd.f32 %v1922_v25, %v4217_v11  ;;  %v2834_v22 = vpop.f32.mrb[139].mxu1 }
 0x273   : > { %v2174_v26 = vadd.f32 %v4251_v51, %v2149_v6  ;;  %v2150_v12 = vadd.f32 %v2093_v4, %v1971_v42  ;;  %v2868_v32 = vpop.f32.mrb[139].mxu0 }
 0x275   : > { %2192 = vst [vmem:[%s4255_s24 + $0x20] sm:$0xff] %v2174_v26  ;;  %v2175_v37 = vadd.f32 %v4251_v51, %v2150_v12 }
 0x277   : > { %2193 = vst [vmem:[%s4255_s24 + $0x28] sm:$0xff] %v2175_v37  ;;  %v1927_v50 = vpop.f32.mrb[140].mxu1 }
 0x278   : > { %v2098_v47 = vpop.f32.mrb[140].mxu0  ;;  %v1974_v35 = vadd.f32 %v1927_v50, %v4220_v34  ;;  %v2837_v55 = vpop.f32.mrb[141].mxu1 }
 0x279   : > { %v2151_v46 = vadd.f32 %v2098_v47, %v1972_v15  ;;  %v2871_v10 = vpop.f32.mrb[141].mxu0  ;;  %v1930_v41 = vpop.f32.mrb[142].mxu1 }
 0x27a   : > { %v2101_v24 = vpop.f32.mrb[142].mxu0  ;;  %v1975_v11 = vadd.f32 %v1930_v41, %v4223_v57  ;;  %v2838_v44 = vpop.f32.mrb[143].mxu1 }
 0x27b   : > { %v2176_v31 = vadd.f32 %v4251_v51, %v2151_v46  ;;  %v2152_v0 = vadd.f32 %v2101_v24, %v1973_v62  ;;  %v2872_v40 = vpop.f32.mrb[143].mxu0 }
 0x27d   : > { %2194 = vst [vmem:[%s4255_s24 + $0x30] sm:$0xff] %v2176_v31  ;;  %v2177_v54 = vadd.f32 %v4251_v51, %v2152_v0 }
 0x27f   : > { %2195 = vst [vmem:[%s4255_s24 + $0x38] sm:$0xff] %v2177_v54  ;;  %v1935_v63 = vpop.f32.mrb[144].mxu1 }
 0x280   : > { %v2106_v60 = vpop.f32.mrb[144].mxu0  ;;  %v1976_v45 = vadd.f32 %v1935_v63, %v4226_v58  ;;  %v2841_v8 = vpop.f32.mrb[145].mxu1 }
 0x281   : > { %v2153_v33 = vadd.f32 %v2106_v60, %v1974_v35  ;;  %v2875_v38 = vpop.f32.mrb[145].mxu0  ;;  %v1938_v19 = vpop.f32.mrb[146].mxu1 }
 0x282   : > { %v2109_v34 = vpop.f32.mrb[146].mxu0  ;;  %v1977_v57 = vadd.f32 %v1938_v19, %v4229_v27  ;;  %v2842_v39 = vpop.f32.mrb[147].mxu1 }
 0x283   : > { %v2178_v53 = vadd.f32 %v4251_v51, %v2153_v33  ;;  %v2154_v23 = vadd.f32 %v2109_v34, %v1975_v11  ;;  %v2876_v21 = vpop.f32.mrb[147].mxu0 }
 0x285   : > { %2196 = vst [vmem:[%s4255_s24 + $0x40] sm:$0xff] %v2178_v53  ;;  %v2179_v1 = vadd.f32 %v4251_v51, %v2154_v23 }
 0x287   : > { %2197 = vst [vmem:[%s4255_s24 + $0x48] sm:$0xff] %v2179_v1  ;;  %v1943_v56 = vpop.f32.mrb[148].mxu1 }
 0x288   : > { %v2114_v16 = vpop.f32.mrb[148].mxu0  ;;  %v1978_v14 = vadd.f32 %v1943_v56, %v4232_v9  ;;  %v2845_v61 = vpop.f32.mrb[149].mxu1 }
 0x289   : > { %v2155_v3 = vadd.f32 %v2114_v16, %v1976_v45  ;;  %v2879_v18 = vpop.f32.mrb[149].mxu0  ;;  %v1946_v59 = vpop.f32.mrb[150].mxu1 }
 0x28a   : > { %v2117_v58 = vpop.f32.mrb[150].mxu0  ;;  %v1979_v27 = vadd.f32 %v1946_v59, %v4235_v5  ;;  %v2846_v49 = vpop.f32.mrb[151].mxu1 }
 0x28b   : > { %v2180_v43 = vadd.f32 %v4251_v51, %v2155_v3  ;;  %v2156_v48 = vadd.f32 %v2117_v58, %v1977_v57  ;;  %v2880_v13 = vpop.f32.mrb[151].mxu0 }
 0x28d   : > { %2198 = vst [vmem:[%s4255_s24 + $0x50] sm:$0xff] %v2180_v43  ;;  %v2181_v42 = vadd.f32 %v4251_v51, %v2156_v48 }
 0x28f   : > { %2199 = vst [vmem:[%s4255_s24 + $0x58] sm:$0xff] %v2181_v42  ;;  %v1951_v2 = vpop.f32.mrb[152].mxu1 }
 0x290   : > { %v2122_v36 = vpop.f32.mrb[152].mxu0  ;;  %v1980_v7 = vadd.f32 %v1951_v2, %v4238_v20  ;;  %v2849_v15 = vpop.f32.mrb[153].mxu1 }
 0x291   : > { %v2157_v17 = vadd.f32 %v2122_v36, %v1978_v14  ;;  %v2883_v6 = vpop.f32.mrb[153].mxu0  ;;  %v1954_v12 = vpop.f32.mrb[154].mxu1 }
 0x292   : > { %v2125_v9 = vpop.f32.mrb[154].mxu0  ;;  %v1981_v5 = vadd.f32 %v1954_v12, %v4241_v30  ;;  %v2850_v25 = vpop.f32.mrb[155].mxu1 }
 0x293   : > { %v2182_v4 = vadd.f32 %v4251_v51, %v2157_v17  ;;  %v2158_v26 = vadd.f32 %v2125_v9, %v1979_v27  ;;  %v2884_v29 = vpop.f32.mrb[155].mxu0 }
 0x295   : > { %2200 = vst [vmem:[%s4255_s24 + $0x60] sm:$0xff] %v2182_v4  ;;  %v2183_v32 = vadd.f32 %v4251_v51, %v2158_v26 }
 0x297   : > { %2201 = vst [vmem:[%s4255_s24 + $0x68] sm:$0xff] %v2183_v32  ;;  %v1959_v22 = vpop.f32.mrb[156].mxu1 }
 0x298   : > { %v2130_v62 = vpop.f32.mrb[156].mxu0  ;;  %v1982_v46 = vadd.f32 %v1959_v22, %v4244_v28  ;;  %v2853_v50 = vpop.f32.mrb[157].mxu1 }
 0x299   : > { %v2159_v37 = vadd.f32 %v2130_v62, %v1980_v7  ;;  %v2887_v20 = vpop.f32.mrb[157].mxu0  ;;  %v1962_v35 = vpop.f32.mrb[158].mxu1 }
 0x29a   : > { %v2133_v47 = vpop.f32.mrb[158].mxu0  ;;  %v1983_v31 = vadd.f32 %v1962_v35, %v4247_v52  ;;  %v2854_v0 = vpop.f32.mrb[159].mxu1 }
 0x29b   : > { %v2184_v10 = vadd.f32 %v4251_v51, %v2159_v37  ;;  %v2160_v24 = vadd.f32 %v2133_v47, %v1981_v5  ;;  %v2888_v30 = vpop.f32.mrb[159].mxu0 }
 0x29d   : > { %2202 = vst [vmem:[%s4255_s24 + $0x70] sm:$0xff] %v2184_v10  ;;  %v2185_v55 = vadd.f32 %v4251_v51, %v2160_v24 }
 0x29f   : > { %2203 = vst [vmem:[%s4255_s24 + $0x78] sm:$0xff] %v2185_v55 }
 0x2a0   : > { %v2138_v28 = vpop.f32.mrb[160].mxu0 }
 0x2a1   : > { %v2161_v40 = vadd.f32 %v2138_v28, %v1982_v46  ;;  %v2891_v41 = vpop.f32.mrb[161].mxu0 }
 0x2a2   : > { %v2141_v11 = vpop.f32.mrb[162].mxu0 }
 0x2a3   : > { %v2186_v54 = vadd.f32 %v4251_v51, %v2161_v40  ;;  %v2162_v44 = vadd.f32 %v2141_v11, %v1983_v31  ;;  %v2892_v60 = vpop.f32.mrb[163].mxu0 }
 0x2a5   : > { %2204 = vst [vmem:[%s4255_s24 + $0x80] sm:$0xff] %v2186_v54  ;;  %v2187_v52 = vadd.f32 %v4251_v51, %v2162_v44 }
 0x2a7   : > { %2205 = vst [vmem:[%s4255_s24 + $0x88] sm:$0xff] %v2187_v52 }
 0x2a8   : > { %3142 = shalt.err (!%p3139_p7)
}
 0x2a9   : > { %s3143_s21 = scalar_lea.hbm %s4314_s5, 2304  ;;  %s3147_s29 = scalar_lea.hbm %s4372_s3, 9216 }
 0x2aa   : > { %p3144_p12 = scmp.ne.s32.totalorder %s4314_s5, %s3143_s21  ;;  %p3148_p5 = scmp.lt.u32.totalorder %s4314_s5, %s4372_s3 }
 0x2ab   : > { %p3149_p9 = scmp.lt.u32.totalorder %s3147_s29, %s3143_s21  ;;  %p3151_p2 = scmp.lt.u32.totalorder %s3143_s21, %s4314_s5 }
 0x2ac   : > { %p3145_p11 = pnand %p3144_p12, %p3408_p6 }
 0x2ad   : > { %p3150_p0 = por %p3149_p9, %p3148_p5 }
 0x2ae   : > { %p3146_p1 = pneg %p3145_p11 }
 0x2af   : > { %p3152_p10 = por %p3151_p2, %p3150_p0 }
 0x2b1   : > { %p3153_p4 = pnand %p3152_p10, %p3146_p1 }
 0x2b3   : > { %3156 = shalt.err (!%p3153_p4)
}
 0x2b4   : > { %s3243_s24 = smov 128   ;;  %s3244_s26 = smov 8  }
 0x2b5   : > { %2911 = dma.vmem_to_hbm [thread:$0]  (%p3408_p6), %s4307_s23, 2304, %s4314_s5, %s2207_s6, %s3243_s24, %s3243_s24, %s3244_s26  }
 0x2b6 PF: > { %p2933_p8 = scmp.ge.s32.totalorder %s3231_s19, 2  ;;  %s2237_s30 = sand.u32 1, %s3203_s12  }
 0x2b7   : > { %p4400_p13 = scmp.ne.s32.totalorder %s4386_s25, 0  ;;  %s2238_s15 = scalar_lea.sflag [#allocation4], %s2237_s30 }
 0x2b9   : > { %p2925_p3 = pnand %p2933_p8, %p4400_p13 }
 0x2bb   : > { %3198 = dma.done.wait (!%p2925_p3), %s2238_s15, 2304  }
 0x2bc   : > { %3200 = vsyncadd (!%p2925_p3), %s2238_s15, 4294964992  ;;  %s20_s19 = sadd.s32 1, %s3231_s19   ;;  %s4401_s15 = sld [smem:[#allocation12_spill]] }
 0x2bd   : > { %p17_p7 = scmp.ge.s32.totalorder %s20_s19, 6   ;;  %s4402_s17 = sld [smem:[#allocation13_spill]] }
 0x2be   : > { %s4403_s4 = sld [smem:[#allocation14_spill]]  ;;  %s4404_s12 = smov %s3207_s13 }
 0x2bf   : > { %s4405_s13 = smov %s3211_s14  ;;  %s4406_s14 = smov %s3427_s1 }
 0x2c0   : > { %s4407_s16 = smov %s3227_s18  ;;  %19 = sbr.rel (!%p17_p7) target bundleno = 11 (0xb), region = 93 }
 0x2c4   : > { %s4408_s18 = smov %s4403_s4 }
 0x2c7   :  { %2243 = vsyncpa [#allocation3], 1 }
 0x2c8   :  { %2245 = vsyncpa [#allocation3 + $0x1], 1 }
 0x2c9   :  { %2246 = vsyncpa [#allocation6], 1 }
 0x2ca   :  { %2247 = vsyncpa [#allocation4], 1 }
 0x2cb   :  { %2249 = vsyncpa [#allocation4 + $0x1], 1 }

</bundles_post_ra>
